<compile_context>
chip_gen: v7x
topology: tpu7x:2x2x1
jax: 0.10.0
libtpu: 0.0.40
codegen_flags: <defaults>
</compile_context>

<pallas_src>
import math
from functools import partial

import jax
import jax.numpy as jnp
from jax.experimental import pallas as pl
from jax.experimental.pallas import tpu as pltpu


# ----------------------------- fused Pallas kernel ---------------------------

def _formant_layer_kernel(x_ref, cond_ref, kmask_ref,
                          wmod_ref, bmod_ref,
                          wqkv_ref, bqkv_ref, wo_ref, bo_ref,
                          w1_ref, b1_ref, w2_ref, b2_ref,
                          lng_ref, lnb_ref, wr_ref, br_ref,
                          o_ref, x_scr, *, hidden, heads):
    """One (batch, layer) grid step: adaLN-MHSA + adaLN-MLP on the resident
    residual stream; final LN + regressor on the last layer step."""
    D = hidden
    dh = D // heads
    l = pl.program_id(1)
    last = pl.num_programs(1) - 1

    # Initialise the residual stream for this batch element.
    @pl.when(l == 0)
    def _():
        x_scr[...] = x_ref[0]                         # (T, D) token+pos embeddings

    x = x_scr[...]                                    # (T, D) f32

    def ln(v):                                        # non-affine LN (DiT style)
        mu = jnp.mean(v, axis=-1, keepdims=True)
        var = jnp.mean((v - mu) ** 2, axis=-1, keepdims=True)
        return (v - mu) * jax.lax.rsqrt(var + 1e-5)

    # --- adaLN modulation: ONE row per batch element, broadcast over T ---
    cond = cond_ref[0]                                # (1, D) silu(speech_emb)
    mod = jnp.dot(cond.astype(jnp.bfloat16), wmod_ref[0],
                  preferred_element_type=jnp.float32) + bmod_ref[0]   # (1, 6D)
    shift1 = mod[:, 0 * D:1 * D]
    scale1 = mod[:, 1 * D:2 * D]
    gate1 = mod[:, 2 * D:3 * D]
    shift2 = mod[:, 3 * D:4 * D]
    scale2 = mod[:, 4 * D:5 * D]
    gate2 = mod[:, 5 * D:6 * D]

    kmask = kmask_ref[0]                              # (1, T) additive key-pad mask

    # --- adaLN + multi-head self-attention (per-batch, T x T scores) ---
    h = ln(x) * (1.0 + scale1) + shift1               # (T, D)
    qkv = jnp.dot(h.astype(jnp.bfloat16), wqkv_ref[0],
                  preferred_element_type=jnp.float32) + bqkv_ref[0]   # (T, 3D)
    # NOTE: 1/sqrt(dh) is already folded into the Q columns of wqkv/bqkv.
    qkv_b = qkv.astype(jnp.bfloat16)
    attn = jnp.zeros_like(x)                          # (T, D) f32 accumulator
    # TODO(synk): dh-wide head slices under-utilise the MXU when dh < 128; use a
    # head-batched dot_general / flash tiling for production head dims & long T.
    for hh in range(heads):
        qh = qkv_b[:, hh * dh:(hh + 1) * dh]                       # (T, dh)
        kh = qkv_b[:, D + hh * dh:D + (hh + 1) * dh]               # (T, dh)
        vh = qkv_b[:, 2 * D + hh * dh:2 * D + (hh + 1) * dh]       # (T, dh)
        s = jax.lax.dot_general(qh, kh, (((1,), (1,)), ((), ())),
                                preferred_element_type=jnp.float32)  # (T, T)
        s = s + kmask
        m = jnp.max(s, axis=-1, keepdims=True)
        p = jnp.exp(s - m)
        p = p * pl.reciprocal(jnp.sum(p, axis=-1, keepdims=True), approx=True)
        ho = jnp.dot(p.astype(jnp.bfloat16), vh,
                     preferred_element_type=jnp.float32)             # (T, dh)
        # fold this head straight into the output projection (no concat)
        attn = attn + jnp.dot(ho.astype(jnp.bfloat16), wo_ref[0, hh],
                              preferred_element_type=jnp.float32)    # (T, D)
    attn = attn + bo_ref[0]
    x = x + gate1 * attn

    # --- adaLN + GELU MLP ---
    h2 = ln(x) * (1.0 + scale2) + shift2
    f = jnp.dot(h2.astype(jnp.bfloat16), w1_ref[0],
                preferred_element_type=jnp.float32) + b1_ref[0]      # (T, 4D)
    f = jax.nn.gelu(f, approximate=True)   # tanh GELU -> EUP (torch erf differs slightly)
    f = jnp.dot(f.astype(jnp.bfloat16), w2_ref[0],
                preferred_element_type=jnp.float32) + b2_ref[0]      # (T, D)
    x = x + gate2 * f

    x_scr[...] = x

    # --- final affine LayerNorm + regressor (lane-padded output) ---
    @pl.when(l == last)
    def _():
        xf = x_scr[...]
        mu = jnp.mean(xf, axis=-1, keepdims=True)
        var = jnp.mean((xf - mu) ** 2, axis=-1, keepdims=True)
        hn = (xf - mu) * jax.lax.rsqrt(var + 1e-5) * lng_ref[...] + lnb_ref[...]
        o_ref[0] = jnp.dot(hn, wr_ref[...],
                           preferred_element_type=jnp.float32) + br_ref[...]


# ----------------------------- parameters ------------------------------------

_LANE_PAD = 128   # regressor output padded to a full lane width for dense stores


def init_params(key, vocab_size, hidden_dim, num_formants, num_layers, max_len,
                num_heads):
    D = hidden_dim
    H = num_heads
    dh = D // H
    inv_sqrt = 1.0 / math.sqrt(dh)
    ks = jax.random.split(key, 8)

    def lin(k, shape):
        return 0.02 * jax.random.normal(k, shape, jnp.float32)

    # fold 1/sqrt(dh) into the Q columns of the fused QKV projection
    wqkv = lin(ks[3], (num_layers, D, 3 * D))
    wqkv = wqkv.at[:, :, :D].multiply(inv_sqrt)

    wr = lin(ks[5], (D, num_formants))
    wr_pad = jnp.zeros((D, _LANE_PAD), jnp.float32).at[:, :num_formants].set(wr)
    br_pad = jnp.zeros((1, _LANE_PAD), jnp.float32)

    bf = jnp.bfloat16
    params = {
        "tok_emb": lin(ks[0], (vocab_size, D)),
        "pos_emb": lin(ks[1], (max_len, D)),
        # stacked per-layer weights (streamed by the layer grid axis), bf16 matmul weights
        "w_mod": lin(ks[2], (num_layers, D, 6 * D)).astype(bf),
        "b_mod": jnp.zeros((num_layers, 1, 6 * D), jnp.float32),
        "wqkv": wqkv.astype(bf),
        "bqkv": jnp.zeros((num_layers, 1, 3 * D), jnp.float32),
        "wo_h": lin(ks[4], (num_layers, H, dh, D)).astype(bf),   # head-split out-proj
        "bo": jnp.zeros((num_layers, 1, D), jnp.float32),
        "w1": lin(ks[6], (num_layers, D, 4 * D)).astype(bf),
        "b1": jnp.zeros((num_layers, 1, 4 * D), jnp.float32),
        "w2": lin(ks[7], (num_layers, 4 * D, D)).astype(bf),
        "b2": jnp.zeros((num_layers, 1, D), jnp.float32),
        "ln_f_gamma": jnp.ones((1, D), jnp.float32),
        "ln_f_beta": jnp.zeros((1, D), jnp.float32),
        "wr_pad": wr_pad,
        "br_pad": br_pad,
        "num_formants": num_formants,
    }
    return params


# ----------------------------- forward wrapper --------------------------------

def formant_predictor_forward(params, token_ids, speech_embedding, pad_token_id=0):
    B, T = token_ids.shape
    D = params["tok_emb"].shape[1]
    L, H, dh, _ = params["wo_h"].shape
    F = params["num_formants"]
    FPAD = params["wr_pad"].shape[1]

    # Embedding lookup + positions (gather glue stays in XLA), per-batch (B,T,D).
    x = (params["tok_emb"][token_ids] + params["pos_emb"][:T][None, :, :]).astype(jnp.float32)

    # AdaLN conditioning: ONE row per batch element (silu applied once here).
    cond = jax.nn.silu(speech_embedding.astype(jnp.float32)).reshape(B, 1, D)

    # Additive key-padding mask, (B,1,T) — no O((B*T)^2) bias slab.
    # TODO(synk): a fully-padded row becomes a uniform softmax (torch would NaN).
    kmask = jnp.where(token_ids == pad_token_id, -1e9, 0.0).astype(jnp.float32).reshape(B, 1, T)

    kernel = partial(_formant_layer_kernel, hidden=D, heads=H)

    # rough cost estimate for the XLA scheduler
    per_layer_flops = (2 * D * 6 * D
                       + 2 * T * D * 3 * D
                       + H * (2 * T * T * dh) * 2
                       + 2 * T * D * D
                       + 2 * T * D * 4 * D * 2)
    flops = B * L * per_layer_flops + B * 2 * T * D * FPAD
    transcendentals = B * L * (H * T * T + T * 4 * D)
    bytes_accessed = (4 * (B * T * D + B * D + B * T + B * T * FPAD + D * FPAD + 3 * D)
                      + 2 * B * L * (18 * D * D)        # bf16 weights, streamed per (b,l)
                      + 4 * B * L * (14 * D))           # f32 biases

    grid_spec = pltpu.PrefetchScalarGridSpec(
        num_scalar_prefetch=0,
        grid=(B, L),
        in_specs=[
            pl.BlockSpec((1, T, D), lambda b, l: (b, 0, 0)),          # x embeddings
            pl.BlockSpec((1, 1, D), lambda b, l: (b, 0, 0)),          # cond row
            pl.BlockSpec((1, 1, T), lambda b, l: (b, 0, 0)),          # key-pad mask
            pl.BlockSpec((1, D, 6 * D), lambda b, l: (l, 0, 0)),      # w_mod (streamed)
            pl.BlockSpec((1, 1, 6 * D), lambda b, l: (l, 0, 0)),      # b_mod
            pl.BlockSpec((1, D, 3 * D), lambda b, l: (l, 0, 0)),      # wqkv
            pl.BlockSpec((1, 1, 3 * D), lambda b, l: (l, 0, 0)),      # bqkv
            pl.BlockSpec((1, H, dh, D), lambda b, l: (l, 0, 0, 0)),   # wo (head-split)
            pl.BlockSpec((1, 1, D), lambda b, l: (l, 0, 0)),          # bo
            pl.BlockSpec((1, D, 4 * D), lambda b, l: (l, 0, 0)),      # w1
            pl.BlockSpec((1, 1, 4 * D), lambda b, l: (l, 0, 0)),      # b1
            pl.BlockSpec((1, 4 * D, D), lambda b, l: (l, 0, 0)),      # w2
            pl.BlockSpec((1, 1, D), lambda b, l: (l, 0, 0)),          # b2
            pl.BlockSpec((1, D), lambda b, l: (0, 0)),                # ln_f gamma
            pl.BlockSpec((1, D), lambda b, l: (0, 0)),                # ln_f beta
            pl.BlockSpec((D, FPAD), lambda b, l: (0, 0)),             # regressor W (padded)
            pl.BlockSpec((1, FPAD), lambda b, l: (0, 0)),             # regressor b (padded)
        ],
        out_specs=pl.BlockSpec((1, T, FPAD), lambda b, l: (b, 0, 0)),
        scratch_shapes=[pltpu.VMEM((T, D), jnp.float32)],             # residual stream
    )

    out = pl.pallas_call(
        kernel,
        out_shape=jax.ShapeDtypeStruct((B, T, FPAD), jnp.float32),
        grid_spec=grid_spec,
        compiler_params=pltpu.CompilerParams(
            dimension_semantics=("parallel", "arbitrary"),
            vmem_limit_bytes=64 * 1024 * 1024,
        ),
        cost_estimate=pl.CostEstimate(flops=int(flops),
                                      transcendentals=int(transcendentals),
                                      bytes_accessed=int(bytes_accessed)),
    )(x, cond, kmask,
      params["w_mod"], params["b_mod"],
      params["wqkv"], params["bqkv"], params["wo_h"], params["bo"],
      params["w1"], params["b1"], params["w2"], params["b2"],
      params["ln_f_gamma"], params["ln_f_beta"],
      params["wr_pad"], params["br_pad"])

    # Lane-padded (B, T, 128) slab -> (B, T, num_formants); slicing is layout glue.
    return out[:, :, :F]
    # TODO(synk): if hidden_dim < 128 in production, zero-pad D to 128 lanes
    # (with sum/D LN corrections) for fully lane-dense VPU work.


# ----------------------------- main -------------------------------------------

if __name__ == "__main__":
    vocab_size, hidden_dim, num_formants, max_len = 50, 32, 3, 16
    num_layers, num_heads = 2, 4
    B, T = 2, 8

    key = jax.random.PRNGKey(0)
    pkey, tkey, skey = jax.random.split(key, 3)

    params = init_params(pkey, vocab_size, hidden_dim, num_formants, num_layers,
                         max_len, num_heads)
    token_ids = jax.random.randint(tkey, (B, T), 0, vocab_size)
    speech_embedding = jax.random.normal(skey, (B, hidden_dim), jnp.float32)

    formants = formant_predictor_forward(params, token_ids, speech_embedding,
                                         pad_token_id=0)
    formants = jax.block_until_ready(formants)
    assert formants.shape == (B, T, num_formants), formants.shape
    assert bool(jnp.all(jnp.isfinite(formants)))
    print("KERNEL_OK")
</pallas_src>

<mosaic_0001>
module attributes {stable_mosaic.version = 11 : i64} {
  func.func @_formant_layer_kernel(%arg0: i32, %arg1: i32, %arg2: memref<1x8x32xf32, #tpu.memory_space<vmem>>, %arg3: memref<1x1x32xf32, #tpu.memory_space<vmem>>, %arg4: memref<1x1x8xf32, #tpu.memory_space<vmem>>, %arg5: memref<1x32x192xbf16, #tpu.memory_space<vmem>>, %arg6: memref<1x1x192xf32, #tpu.memory_space<vmem>>, %arg7: memref<1x32x96xbf16, #tpu.memory_space<vmem>>, %arg8: memref<1x1x96xf32, #tpu.memory_space<vmem>>, %arg9: memref<1x4x8x32xbf16, #tpu.memory_space<vmem>>, %arg10: memref<1x1x32xf32, #tpu.memory_space<vmem>>, %arg11: memref<1x32x128xbf16, #tpu.memory_space<vmem>>, %arg12: memref<1x1x128xf32, #tpu.memory_space<vmem>>, %arg13: memref<1x128x32xbf16, #tpu.memory_space<vmem>>, %arg14: memref<1x1x32xf32, #tpu.memory_space<vmem>>, %arg15: memref<1x32xf32, #tpu.memory_space<vmem>>, %arg16: memref<1x32xf32, #tpu.memory_space<vmem>>, %arg17: memref<32x128xf32, #tpu.memory_space<vmem>>, %arg18: memref<1x128xf32, #tpu.memory_space<vmem>>, %arg19: memref<1x8x128xf32, #tpu.memory_space<vmem>>, %arg20: memref<8x32xf32, #tpu.memory_space<vmem>>) attributes {dimension_semantics = [#tpu.dimension_semantics<parallel>, #tpu.dimension_semantics<arbitrary>], iteration_bounds = array<i64: 2, 2>, scalar_prefetch = 0 : i64, scratch_operands = 1 : i64, tpu.core_type = #tpu.core_type<tc>, window_params = [{transform_indices = @transform_0, window_bounds = array<i64: 1, 8, 32>}, {transform_indices = @transform_1, window_bounds = array<i64: 1, 1, 32>}, {transform_indices = @transform_2, window_bounds = array<i64: 1, 1, 8>}, {transform_indices = @transform_3, window_bounds = array<i64: 1, 32, 192>}, {transform_indices = @transform_4, window_bounds = array<i64: 1, 1, 192>}, {transform_indices = @transform_5, window_bounds = array<i64: 1, 32, 96>}, {transform_indices = @transform_6, window_bounds = array<i64: 1, 1, 96>}, {transform_indices = @transform_7, window_bounds = array<i64: 1, 4, 8, 32>}, {transform_indices = @transform_8, window_bounds = array<i64: 1, 1, 32>}, {transform_indices = @transform_9, window_bounds = array<i64: 1, 32, 128>}, {transform_indices = @transform_10, window_bounds = array<i64: 1, 1, 128>}, {transform_indices = @transform_11, window_bounds = array<i64: 1, 128, 32>}, {transform_indices = @transform_12, window_bounds = array<i64: 1, 1, 32>}, {pipeline_mode = #tpu.pipeline_mode<synchronous>, transform_indices = @transform_13, window_bounds = array<i64: 1, 32>}, {pipeline_mode = #tpu.pipeline_mode<synchronous>, transform_indices = @transform_14, window_bounds = array<i64: 1, 32>}, {pipeline_mode = #tpu.pipeline_mode<synchronous>, transform_indices = @transform_15, window_bounds = array<i64: 32, 128>}, {pipeline_mode = #tpu.pipeline_mode<synchronous>, transform_indices = @transform_16, window_bounds = array<i64: 1, 128>}, {transform_indices = @transform_17, window_bounds = array<i64: 1, 8, 128>}]} {
    %c0_i32 = arith.constant 0 : i32
    %0 = arith.cmpi eq, %arg1, %c0_i32 : i32
    %1 = arith.extui %0 : i1 to i32
    %c0_i32_0 = arith.constant 0 : i32
    %2 = arith.cmpi ne, %1, %c0_i32_0 : i32
    scf.if %2 {
      %c0_91 = arith.constant 0 : index
      %c0_92 = arith.constant 0 : index
      %c0_93 = arith.constant 0 : index
      %214 = vector.load %arg2[%c0_91, %c0_92, %c0_93] : memref<1x8x32xf32, #tpu.memory_space<vmem>>, vector<1x8x32xf32>
      %215 = vector.shape_cast %214 : vector<1x8x32xf32> to vector<8x32xf32>
      %c0_94 = arith.constant 0 : index
      %c0_95 = arith.constant 0 : index
      %216 = vector.load %arg20[%c0_94, %c0_95] : memref<8x32xf32, #tpu.memory_space<vmem>>, vector<8x32xf32>
      tpu.vector_store %arg20[%c0_94, %c0_95], %215 {strides = array<i32>} : memref<8x32xf32, #tpu.memory_space<vmem>>, vector<8x32xf32>,
    } else {
    }
    %c0 = arith.constant 0 : index
    %c0_1 = arith.constant 0 : index
    %3 = vector.load %arg20[%c0, %c0_1] : memref<8x32xf32, #tpu.memory_space<vmem>>, vector<8x32xf32>
    %c0_2 = arith.constant 0 : index
    %c0_3 = arith.constant 0 : index
    %c0_4 = arith.constant 0 : index
    %4 = vector.load %arg3[%c0_2, %c0_3, %c0_4] : memref<1x1x32xf32, #tpu.memory_space<vmem>>, vector<1x1x32xf32>
    %5 = vector.shape_cast %4 : vector<1x1x32xf32> to vector<1x32xf32>
    %6 = arith.truncf %5 : vector<1x32xf32> to vector<1x32xbf16>
    %c0_5 = arith.constant 0 : index
    %c0_6 = arith.constant 0 : index
    %c0_7 = arith.constant 0 : index
    %7 = vector.load %arg5[%c0_5, %c0_6, %c0_7] : memref<1x32x192xbf16, #tpu.memory_space<vmem>>, vector<1x32x192xbf16>
    %8 = vector.shape_cast %7 : vector<1x32x192xbf16> to vector<32x192xbf16>
    %cst = arith.constant dense<0.000000e+00> : vector<1x192xf32>
    %9 = tpu.matmul %6, %8, %cst {dimension_numbers = #tpu.dot_dimension_numbers<[1], [0], [0], [1], [0, 0, 1, 1], [], []>} : vector<1x32xbf16>, vector<32x192xbf16>, vector<1x192xf32> -> vector<1x192xf32>
    %c0_8 = arith.constant 0 : index
    %c0_9 = arith.constant 0 : index
    %c0_10 = arith.constant 0 : index
    %10 = vector.load %arg6[%c0_8, %c0_9, %c0_10] : memref<1x1x192xf32, #tpu.memory_space<vmem>>, vector<1x1x192xf32>
    %11 = vector.shape_cast %10 : vector<1x1x192xf32> to vector<1x192xf32>
    %12 = arith.addf %9, %11 : vector<1x192xf32>
    %13 = vector.extract_strided_slice %12 {offsets = [0, 0], sizes = [1, 32], strides = [1, 1]} : vector<1x192xf32> to vector<1x32xf32>
    %14 = vector.extract_strided_slice %12 {offsets = [0, 32], sizes = [1, 32], strides = [1, 1]} : vector<1x192xf32> to vector<1x32xf32>
    %15 = vector.extract_strided_slice %12 {offsets = [0, 64], sizes = [1, 32], strides = [1, 1]} : vector<1x192xf32> to vector<1x32xf32>
    %16 = vector.extract_strided_slice %12 {offsets = [0, 96], sizes = [1, 32], strides = [1, 1]} : vector<1x192xf32> to vector<1x32xf32>
    %17 = vector.extract_strided_slice %12 {offsets = [0, 128], sizes = [1, 32], strides = [1, 1]} : vector<1x192xf32> to vector<1x32xf32>
    %18 = vector.extract_strided_slice %12 {offsets = [0, 160], sizes = [1, 32], strides = [1, 1]} : vector<1x192xf32> to vector<1x32xf32>
    %c0_11 = arith.constant 0 : index
    %c0_12 = arith.constant 0 : index
    %c0_13 = arith.constant 0 : index
    %19 = vector.load %arg4[%c0_11, %c0_12, %c0_13] : memref<1x1x8xf32, #tpu.memory_space<vmem>>, vector<1x1x8xf32>
    %20 = vector.shape_cast %19 : vector<1x1x8xf32> to vector<1x8xf32>
    %cst_14 = arith.constant dense<0.000000e+00> : vector<8xf32>
    %21 = vector.multi_reduction <add>, %3, %cst_14 [1] : vector<8x32xf32> to vector<8xf32>
    %22 = vector.shape_cast %21 : vector<8xf32> to vector<8x1xf32>
    %cst_15 = arith.constant 3.200000e+01 : f32
    %23 = vector.broadcast %cst_15 : f32 to vector<8x1xf32>
    %24 = arith.divf %22, %23 : vector<8x1xf32>
    %25 = vector.broadcast %24 : vector<8x1xf32> to vector<8x32xf32>
    %26 = arith.subf %3, %25 : vector<8x32xf32>
    %27 = arith.mulf %26, %26 : vector<8x32xf32>
    %cst_16 = arith.constant dense<0.000000e+00> : vector<8xf32>
    %28 = vector.multi_reduction <add>, %27, %cst_16 [1] : vector<8x32xf32> to vector<8xf32>
    %29 = vector.shape_cast %28 : vector<8xf32> to vector<8x1xf32>
    %cst_17 = arith.constant 3.200000e+01 : f32
    %30 = vector.broadcast %cst_17 : f32 to vector<8x1xf32>
    %31 = arith.divf %29, %30 : vector<8x1xf32>
    %32 = vector.broadcast %24 : vector<8x1xf32> to vector<8x32xf32>
    %33 = arith.subf %3, %32 : vector<8x32xf32>
    %cst_18 = arith.constant 9.99999974E-6 : f32
    %34 = vector.broadcast %cst_18 : f32 to vector<8x1xf32>
    %35 = arith.addf %31, %34 : vector<8x1xf32>
    %36 = math.rsqrt %35 : vector<8x1xf32>
    %37 = vector.broadcast %36 : vector<8x1xf32> to vector<8x32xf32>
    %38 = arith.mulf %33, %37 : vector<8x32xf32>
    %cst_19 = arith.constant 1.000000e+00 : f32
    %39 = vector.broadcast %cst_19 : f32 to vector<1x32xf32>
    %40 = arith.addf %39, %14 : vector<1x32xf32>
    %41 = vector.broadcast %40 : vector<1x32xf32> to vector<8x32xf32>
    %42 = arith.mulf %38, %41 : vector<8x32xf32>
    %43 = vector.broadcast %13 : vector<1x32xf32> to vector<8x32xf32>
    %44 = arith.addf %42, %43 : vector<8x32xf32>
    %45 = arith.truncf %44 : vector<8x32xf32> to vector<8x32xbf16>
    %c0_20 = arith.constant 0 : index
    %c0_21 = arith.constant 0 : index
    %c0_22 = arith.constant 0 : index
    %46 = vector.load %arg7[%c0_20, %c0_21, %c0_22] : memref<1x32x96xbf16, #tpu.memory_space<vmem>>, vector<1x32x96xbf16>
    %47 = vector.shape_cast %46 : vector<1x32x96xbf16> to vector<32x96xbf16>
    %cst_23 = arith.constant dense<0.000000e+00> : vector<8x96xf32>
    %48 = tpu.matmul %45, %47, %cst_23 {dimension_numbers = #tpu.dot_dimension_numbers<[1], [0], [0], [1], [0, 0, 1, 1], [], []>} : vector<8x32xbf16>, vector<32x96xbf16>, vector<8x96xf32> -> vector<8x96xf32>
    %c0_24 = arith.constant 0 : index
    %c0_25 = arith.constant 0 : index
    %c0_26 = arith.constant 0 : index
    %49 = vector.load %arg8[%c0_24, %c0_25, %c0_26] : memref<1x1x96xf32, #tpu.memory_space<vmem>>, vector<1x1x96xf32>
    %50 = vector.shape_cast %49 : vector<1x1x96xf32> to vector<1x96xf32>
    %51 = vector.broadcast %50 : vector<1x96xf32> to vector<8x96xf32>
    %52 = arith.addf %48, %51 : vector<8x96xf32>
    %53 = arith.truncf %52 : vector<8x96xf32> to vector<8x96xbf16>
    %cst_27 = arith.constant 0.000000e+00 : f32
    %54 = vector.broadcast %cst_27 : f32 to vector<8x32xf32>
    %55 = vector.extract_strided_slice %53 {offsets = [0, 0], sizes = [8, 8], strides = [1, 1]} : vector<8x96xbf16> to vector<8x8xbf16>
    %56 = vector.extract_strided_slice %53 {offsets = [0, 32], sizes = [8, 8], strides = [1, 1]} : vector<8x96xbf16> to vector<8x8xbf16>
    %57 = vector.extract_strided_slice %53 {offsets = [0, 64], sizes = [8, 8], strides = [1, 1]} : vector<8x96xbf16> to vector<8x8xbf16>
    %cst_28 = arith.constant dense<0.000000e+00> : vector<8x8xf32>
    %58 = tpu.matmul %55, %56, %cst_28 {dimension_numbers = #tpu.dot_dimension_numbers<[1], [1], [0], [0], [0, 0, 1, 0], [], []>} : vector<8x8xbf16>, vector<8x8xbf16>, vector<8x8xf32> -> vector<8x8xf32>
    %59 = vector.broadcast %20 : vector<1x8xf32> to vector<8x8xf32>
    %60 = arith.addf %58, %59 : vector<8x8xf32>
    %cst_29 = arith.constant dense<0xFF800000> : vector<8xf32>
    %61 = vector.multi_reduction <maximumf>, %60, %cst_29 [1] : vector<8x8xf32> to vector<8xf32>
    %62 = vector.shape_cast %61 : vector<8xf32> to vector<8x1xf32>
    %63 = vector.broadcast %62 : vector<8x1xf32> to vector<8x8xf32>
    %64 = arith.subf %60, %63 : vector<8x8xf32>
    %65 = math.exp %64 : vector<8x8xf32>
    %cst_30 = arith.constant dense<0.000000e+00> : vector<8xf32>
    %66 = vector.multi_reduction <add>, %65, %cst_30 [1] : vector<8x8xf32> to vector<8xf32>
    %67 = vector.shape_cast %66 : vector<8xf32> to vector<8x1xf32>
    %68 = tpu.reciprocal %67 {approx = true} : vector<8x1xf32> -> vector<8x1xf32>
    %69 = vector.broadcast %68 : vector<8x1xf32> to vector<8x8xf32>
    %70 = arith.mulf %65, %69 : vector<8x8xf32>
    %71 = arith.truncf %70 : vector<8x8xf32> to vector<8x8xbf16>
    %cst_31 = arith.constant dense<0.000000e+00> : vector<8x8xf32>
    %72 = tpu.matmul %71, %57, %cst_31 {dimension_numbers = #tpu.dot_dimension_numbers<[1], [0], [0], [1], [0, 0, 1, 1], [], []>} : vector<8x8xbf16>, vector<8x8xbf16>, vector<8x8xf32> -> vector<8x8xf32>
    %73 = arith.truncf %72 : vector<8x8xf32> to vector<8x8xbf16>
    %c0_32 = arith.constant 0 : index
    %c0_33 = arith.constant 0 : index
    %c0_34 = arith.constant 0 : index
    %c0_35 = arith.constant 0 : index
    %74 = vector.load %arg9[%c0_32, %c0_33, %c0_34, %c0_35] : memref<1x4x8x32xbf16, #tpu.memory_space<vmem>>, vector<1x1x8x32xbf16>
    %75 = vector.shape_cast %74 : vector<1x1x8x32xbf16> to vector<8x32xbf16>
    %cst_36 = arith.constant dense<0.000000e+00> : vector<8x32xf32>
    %76 = tpu.matmul %73, %75, %cst_36 {dimension_numbers = #tpu.dot_dimension_numbers<[1], [0], [0], [1], [0, 0, 1, 1], [], []>} : vector<8x8xbf16>, vector<8x32xbf16>, vector<8x32xf32> -> vector<8x32xf32>
    %77 = arith.addf %54, %76 : vector<8x32xf32>
    %78 = vector.extract_strided_slice %53 {offsets = [0, 8], sizes = [8, 8], strides = [1, 1]} : vector<8x96xbf16> to vector<8x8xbf16>
    %79 = vector.extract_strided_slice %53 {offsets = [0, 40], sizes = [8, 8], strides = [1, 1]} : vector<8x96xbf16> to vector<8x8xbf16>
    %80 = vector.extract_strided_slice %53 {offsets = [0, 72], sizes = [8, 8], strides = [1, 1]} : vector<8x96xbf16> to vector<8x8xbf16>
    %cst_37 = arith.constant dense<0.000000e+00> : vector<8x8xf32>
    %81 = tpu.matmul %78, %79, %cst_37 {dimension_numbers = #tpu.dot_dimension_numbers<[1], [1], [0], [0], [0, 0, 1, 0], [], []>} : vector<8x8xbf16>, vector<8x8xbf16>, vector<8x8xf32> -> vector<8x8xf32>
    %82 = vector.broadcast %20 : vector<1x8xf32> to vector<8x8xf32>
    %83 = arith.addf %81, %82 : vector<8x8xf32>
    %cst_38 = arith.constant dense<0xFF800000> : vector<8xf32>
    %84 = vector.multi_reduction <maximumf>, %83, %cst_38 [1] : vector<8x8xf32> to vector<8xf32>
    %85 = vector.shape_cast %84 : vector<8xf32> to vector<8x1xf32>
    %86 = vector.broadcast %85 : vector<8x1xf32> to vector<8x8xf32>
    %87 = arith.subf %83, %86 : vector<8x8xf32>
    %88 = math.exp %87 : vector<8x8xf32>
    %cst_39 = arith.constant dense<0.000000e+00> : vector<8xf32>
    %89 = vector.multi_reduction <add>, %88, %cst_39 [1] : vector<8x8xf32> to vector<8xf32>
    %90 = vector.shape_cast %89 : vector<8xf32> to vector<8x1xf32>
    %91 = tpu.reciprocal %90 {approx = true} : vector<8x1xf32> -> vector<8x1xf32>
    %92 = vector.broadcast %91 : vector<8x1xf32> to vector<8x8xf32>
    %93 = arith.mulf %88, %92 : vector<8x8xf32>
    %94 = arith.truncf %93 : vector<8x8xf32> to vector<8x8xbf16>
    %cst_40 = arith.constant dense<0.000000e+00> : vector<8x8xf32>
    %95 = tpu.matmul %94, %80, %cst_40 {dimension_numbers = #tpu.dot_dimension_numbers<[1], [0], [0], [1], [0, 0, 1, 1], [], []>} : vector<8x8xbf16>, vector<8x8xbf16>, vector<8x8xf32> -> vector<8x8xf32>
    %96 = arith.truncf %95 : vector<8x8xf32> to vector<8x8xbf16>
    %c0_41 = arith.constant 0 : index
    %c1 = arith.constant 1 : index
    %c0_42 = arith.constant 0 : index
    %c0_43 = arith.constant 0 : index
    %97 = vector.load %arg9[%c0_41, %c1, %c0_42, %c0_43] : memref<1x4x8x32xbf16, #tpu.memory_space<vmem>>, vector<1x1x8x32xbf16>
    %98 = vector.shape_cast %97 : vector<1x1x8x32xbf16> to vector<8x32xbf16>
    %cst_44 = arith.constant dense<0.000000e+00> : vector<8x32xf32>
    %99 = tpu.matmul %96, %98, %cst_44 {dimension_numbers = #tpu.dot_dimension_numbers<[1], [0], [0], [1], [0, 0, 1, 1], [], []>} : vector<8x8xbf16>, vector<8x32xbf16>, vector<8x32xf32> -> vector<8x32xf32>
    %100 = arith.addf %77, %99 : vector<8x32xf32>
    %101 = vector.extract_strided_slice %53 {offsets = [0, 16], sizes = [8, 8], strides = [1, 1]} : vector<8x96xbf16> to vector<8x8xbf16>
    %102 = vector.extract_strided_slice %53 {offsets = [0, 48], sizes = [8, 8], strides = [1, 1]} : vector<8x96xbf16> to vector<8x8xbf16>
    %103 = vector.extract_strided_slice %53 {offsets = [0, 80], sizes = [8, 8], strides = [1, 1]} : vector<8x96xbf16> to vector<8x8xbf16>
    %cst_45 = arith.constant dense<0.000000e+00> : vector<8x8xf32>
    %104 = tpu.matmul %101, %102, %cst_45 {dimension_numbers = #tpu.dot_dimension_numbers<[1], [1], [0], [0], [0, 0, 1, 0], [], []>} : vector<8x8xbf16>, vector<8x8xbf16>, vector<8x8xf32> -> vector<8x8xf32>
    %105 = vector.broadcast %20 : vector<1x8xf32> to vector<8x8xf32>
    %106 = arith.addf %104, %105 : vector<8x8xf32>
    %cst_46 = arith.constant dense<0xFF800000> : vector<8xf32>
    %107 = vector.multi_reduction <maximumf>, %106, %cst_46 [1] : vector<8x8xf32> to vector<8xf32>
    %108 = vector.shape_cast %107 : vector<8xf32> to vector<8x1xf32>
    %109 = vector.broadcast %108 : vector<8x1xf32> to vector<8x8xf32>
    %110 = arith.subf %106, %109 : vector<8x8xf32>
    %111 = math.exp %110 : vector<8x8xf32>
    %cst_47 = arith.constant dense<0.000000e+00> : vector<8xf32>
    %112 = vector.multi_reduction <add>, %111, %cst_47 [1] : vector<8x8xf32> to vector<8xf32>
    %113 = vector.shape_cast %112 : vector<8xf32> to vector<8x1xf32>
    %114 = tpu.reciprocal %113 {approx = true} : vector<8x1xf32> -> vector<8x1xf32>
    %115 = vector.broadcast %114 : vector<8x1xf32> to vector<8x8xf32>
    %116 = arith.mulf %111, %115 : vector<8x8xf32>
    %117 = arith.truncf %116 : vector<8x8xf32> to vector<8x8xbf16>
    %cst_48 = arith.constant dense<0.000000e+00> : vector<8x8xf32>
    %118 = tpu.matmul %117, %103, %cst_48 {dimension_numbers = #tpu.dot_dimension_numbers<[1], [0], [0], [1], [0, 0, 1, 1], [], []>} : vector<8x8xbf16>, vector<8x8xbf16>, vector<8x8xf32> -> vector<8x8xf32>
    %119 = arith.truncf %118 : vector<8x8xf32> to vector<8x8xbf16>
    %c0_49 = arith.constant 0 : index
    %c2 = arith.constant 2 : index
    %c0_50 = arith.constant 0 : index
    %c0_51 = arith.constant 0 : index
    %120 = vector.load %arg9[%c0_49, %c2, %c0_50, %c0_51] : memref<1x4x8x32xbf16, #tpu.memory_space<vmem>>, vector<1x1x8x32xbf16>
    %121 = vector.shape_cast %120 : vector<1x1x8x32xbf16> to vector<8x32xbf16>
    %cst_52 = arith.constant dense<0.000000e+00> : vector<8x32xf32>
    %122 = tpu.matmul %119, %121, %cst_52 {dimension_numbers = #tpu.dot_dimension_numbers<[1], [0], [0], [1], [0, 0, 1, 1], [], []>} : vector<8x8xbf16>, vector<8x32xbf16>, vector<8x32xf32> -> vector<8x32xf32>
    %123 = arith.addf %100, %122 : vector<8x32xf32>
    %124 = vector.extract_strided_slice %53 {offsets = [0, 24], sizes = [8, 8], strides = [1, 1]} : vector<8x96xbf16> to vector<8x8xbf16>
    %125 = vector.extract_strided_slice %53 {offsets = [0, 56], sizes = [8, 8], strides = [1, 1]} : vector<8x96xbf16> to vector<8x8xbf16>
    %126 = vector.extract_strided_slice %53 {offsets = [0, 88], sizes = [8, 8], strides = [1, 1]} : vector<8x96xbf16> to vector<8x8xbf16>
    %cst_53 = arith.constant dense<0.000000e+00> : vector<8x8xf32>
    %127 = tpu.matmul %124, %125, %cst_53 {dimension_numbers = #tpu.dot_dimension_numbers<[1], [1], [0], [0], [0, 0, 1, 0], [], []>} : vector<8x8xbf16>, vector<8x8xbf16>, vector<8x8xf32> -> vector<8x8xf32>
    %128 = vector.broadcast %20 : vector<1x8xf32> to vector<8x8xf32>
    %129 = arith.addf %127, %128 : vector<8x8xf32>
    %cst_54 = arith.constant dense<0xFF800000> : vector<8xf32>
    %130 = vector.multi_reduction <maximumf>, %129, %cst_54 [1] : vector<8x8xf32> to vector<8xf32>
    %131 = vector.shape_cast %130 : vector<8xf32> to vector<8x1xf32>
    %132 = vector.broadcast %131 : vector<8x1xf32> to vector<8x8xf32>
    %133 = arith.subf %129, %132 : vector<8x8xf32>
    %134 = math.exp %133 : vector<8x8xf32>
    %cst_55 = arith.constant dense<0.000000e+00> : vector<8xf32>
    %135 = vector.multi_reduction <add>, %134, %cst_55 [1] : vector<8x8xf32> to vector<8xf32>
    %136 = vector.shape_cast %135 : vector<8xf32> to vector<8x1xf32>
    %137 = tpu.reciprocal %136 {approx = true} : vector<8x1xf32> -> vector<8x1xf32>
    %138 = vector.broadcast %137 : vector<8x1xf32> to vector<8x8xf32>
    %139 = arith.mulf %134, %138 : vector<8x8xf32>
    %140 = arith.truncf %139 : vector<8x8xf32> to vector<8x8xbf16>
    %cst_56 = arith.constant dense<0.000000e+00> : vector<8x8xf32>
    %141 = tpu.matmul %140, %126, %cst_56 {dimension_numbers = #tpu.dot_dimension_numbers<[1], [0], [0], [1], [0, 0, 1, 1], [], []>} : vector<8x8xbf16>, vector<8x8xbf16>, vector<8x8xf32> -> vector<8x8xf32>
    %142 = arith.truncf %141 : vector<8x8xf32> to vector<8x8xbf16>
    %c0_57 = arith.constant 0 : index
    %c3 = arith.constant 3 : index
    %c0_58 = arith.constant 0 : index
    %c0_59 = arith.constant 0 : index
    %143 = vector.load %arg9[%c0_57, %c3, %c0_58, %c0_59] : memref<1x4x8x32xbf16, #tpu.memory_space<vmem>>, vector<1x1x8x32xbf16>
    %144 = vector.shape_cast %143 : vector<1x1x8x32xbf16> to vector<8x32xbf16>
    %cst_60 = arith.constant dense<0.000000e+00> : vector<8x32xf32>
    %145 = tpu.matmul %142, %144, %cst_60 {dimension_numbers = #tpu.dot_dimension_numbers<[1], [0], [0], [1], [0, 0, 1, 1], [], []>} : vector<8x8xbf16>, vector<8x32xbf16>, vector<8x32xf32> -> vector<8x32xf32>
    %146 = arith.addf %123, %145 : vector<8x32xf32>
    %c0_61 = arith.constant 0 : index
    %c0_62 = arith.constant 0 : index
    %c0_63 = arith.constant 0 : index
    %147 = vector.load %arg10[%c0_61, %c0_62, %c0_63] : memref<1x1x32xf32, #tpu.memory_space<vmem>>, vector<1x1x32xf32>
    %148 = vector.shape_cast %147 : vector<1x1x32xf32> to vector<1x32xf32>
    %149 = vector.broadcast %148 : vector<1x32xf32> to vector<8x32xf32>
    %150 = arith.addf %146, %149 : vector<8x32xf32>
    %151 = vector.broadcast %15 : vector<1x32xf32> to vector<8x32xf32>
    %152 = arith.mulf %151, %150 : vector<8x32xf32>
    %153 = arith.addf %3, %152 : vector<8x32xf32>
    %cst_64 = arith.constant dense<0.000000e+00> : vector<8xf32>
    %154 = vector.multi_reduction <add>, %153, %cst_64 [1] : vector<8x32xf32> to vector<8xf32>
    %155 = vector.shape_cast %154 : vector<8xf32> to vector<8x1xf32>
    %cst_65 = arith.constant 3.200000e+01 : f32
    %156 = vector.broadcast %cst_65 : f32 to vector<8x1xf32>
    %157 = arith.divf %155, %156 : vector<8x1xf32>
    %158 = vector.broadcast %157 : vector<8x1xf32> to vector<8x32xf32>
    %159 = arith.subf %153, %158 : vector<8x32xf32>
    %160 = arith.mulf %159, %159 : vector<8x32xf32>
    %cst_66 = arith.constant dense<0.000000e+00> : vector<8xf32>
    %161 = vector.multi_reduction <add>, %160, %cst_66 [1] : vector<8x32xf32> to vector<8xf32>
    %162 = vector.shape_cast %161 : vector<8xf32> to vector<8x1xf32>
    %cst_67 = arith.constant 3.200000e+01 : f32
    %163 = vector.broadcast %cst_67 : f32 to vector<8x1xf32>
    %164 = arith.divf %162, %163 : vector<8x1xf32>
    %165 = vector.broadcast %157 : vector<8x1xf32> to vector<8x32xf32>
    %166 = arith.subf %153, %165 : vector<8x32xf32>
    %cst_68 = arith.constant 9.99999974E-6 : f32
    %167 = vector.broadcast %cst_68 : f32 to vector<8x1xf32>
    %168 = arith.addf %164, %167 : vector<8x1xf32>
    %169 = math.rsqrt %168 : vector<8x1xf32>
    %170 = vector.broadcast %169 : vector<8x1xf32> to vector<8x32xf32>
    %171 = arith.mulf %166, %170 : vector<8x32xf32>
    %cst_69 = arith.constant 1.000000e+00 : f32
    %172 = vector.broadcast %cst_69 : f32 to vector<1x32xf32>
    %173 = arith.addf %172, %17 : vector<1x32xf32>
    %174 = vector.broadcast %173 : vector<1x32xf32> to vector<8x32xf32>
    %175 = arith.mulf %171, %174 : vector<8x32xf32>
    %176 = vector.broadcast %16 : vector<1x32xf32> to vector<8x32xf32>
    %177 = arith.addf %175, %176 : vector<8x32xf32>
    %178 = arith.truncf %177 : vector<8x32xf32> to vector<8x32xbf16>
    %c0_70 = arith.constant 0 : index
    %c0_71 = arith.constant 0 : index
    %c0_72 = arith.constant 0 : index
    %179 = vector.load %arg11[%c0_70, %c0_71, %c0_72] : memref<1x32x128xbf16, #tpu.memory_space<vmem>>, vector<1x32x128xbf16>
    %180 = vector.shape_cast %179 : vector<1x32x128xbf16> to vector<32x128xbf16>
    %cst_73 = arith.constant dense<0.000000e+00> : vector<8x128xf32>
    %181 = tpu.matmul %178, %180, %cst_73 {dimension_numbers = #tpu.dot_dimension_numbers<[1], [0], [0], [1], [0, 0, 1, 1], [], []>} : vector<8x32xbf16>, vector<32x128xbf16>, vector<8x128xf32> -> vector<8x128xf32>
    %c0_74 = arith.constant 0 : index
    %c0_75 = arith.constant 0 : index
    %c0_76 = arith.constant 0 : index
    %182 = vector.load %arg12[%c0_74, %c0_75, %c0_76] : memref<1x1x128xf32, #tpu.memory_space<vmem>>, vector<1x1x128xf32>
    %183 = vector.shape_cast %182 : vector<1x1x128xf32> to vector<1x128xf32>
    %184 = vector.broadcast %183 : vector<1x128xf32> to vector<8x128xf32>
    %185 = arith.addf %181, %184 : vector<8x128xf32>
    %186 = arith.mulf %185, %185 : vector<8x128xf32>
    %187 = arith.mulf %185, %186 : vector<8x128xf32>
    %cst_77 = arith.constant 4.471500e-02 : f32
    %188 = vector.broadcast %cst_77 : f32 to vector<8x128xf32>
    %189 = arith.mulf %188, %187 : vector<8x128xf32>
    %190 = arith.addf %185, %189 : vector<8x128xf32>
    %cst_78 = arith.constant 0.797884583 : f32
    %191 = vector.broadcast %cst_78 : f32 to vector<8x128xf32>
    %192 = arith.mulf %191, %190 : vector<8x128xf32>
    %193 = math.tanh %192 : vector<8x128xf32>
    %cst_79 = arith.constant 1.000000e+00 : f32
    %194 = vector.broadcast %cst_79 : f32 to vector<8x128xf32>
    %195 = arith.addf %194, %193 : vector<8x128xf32>
    %cst_80 = arith.constant 5.000000e-01 : f32
    %196 = vector.broadcast %cst_80 : f32 to vector<8x128xf32>
    %197 = arith.mulf %196, %195 : vector<8x128xf32>
    %198 = arith.mulf %185, %197 : vector<8x128xf32>
    %199 = arith.truncf %198 : vector<8x128xf32> to vector<8x128xbf16>
    %c0_81 = arith.constant 0 : index
    %c0_82 = arith.constant 0 : index
    %c0_83 = arith.constant 0 : index
    %200 = vector.load %arg13[%c0_81, %c0_82, %c0_83] : memref<1x128x32xbf16, #tpu.memory_space<vmem>>, vector<1x128x32xbf16>
    %201 = vector.shape_cast %200 : vector<1x128x32xbf16> to vector<128x32xbf16>
    %cst_84 = arith.constant dense<0.000000e+00> : vector<8x32xf32>
    %202 = tpu.matmul %199, %201, %cst_84 {dimension_numbers = #tpu.dot_dimension_numbers<[1], [0], [0], [1], [0, 0, 1, 1], [], []>} : vector<8x128xbf16>, vector<128x32xbf16>, vector<8x32xf32> -> vector<8x32xf32>
    %c0_85 = arith.constant 0 : index
    %c0_86 = arith.constant 0 : index
    %c0_87 = arith.constant 0 : index
    %203 = vector.load %arg14[%c0_85, %c0_86, %c0_87] : memref<1x1x32xf32, #tpu.memory_space<vmem>>, vector<1x1x32xf32>
    %204 = vector.shape_cast %203 : vector<1x1x32xf32> to vector<1x32xf32>
    %205 = vector.broadcast %204 : vector<1x32xf32> to vector<8x32xf32>
    %206 = arith.addf %202, %205 : vector<8x32xf32>
    %207 = vector.broadcast %18 : vector<1x32xf32> to vector<8x32xf32>
    %208 = arith.mulf %207, %206 : vector<8x32xf32>
    %209 = arith.addf %153, %208 : vector<8x32xf32>
    %c0_88 = arith.constant 0 : index
    %c0_89 = arith.constant 0 : index
    %210 = vector.load %arg20[%c0_88, %c0_89] : memref<8x32xf32, #tpu.memory_space<vmem>>, vector<8x32xf32>
    tpu.vector_store %arg20[%c0_88, %c0_89], %209 {strides = array<i32>} : memref<8x32xf32, #tpu.memory_space<vmem>>, vector<8x32xf32>,
    %c1_i32 = arith.constant 1 : i32
    %211 = arith.cmpi eq, %arg1, %c1_i32 : i32
    %212 = arith.extui %211 : i1 to i32
    %c0_i32_90 = arith.constant 0 : i32
    %213 = arith.cmpi ne, %212, %c0_i32_90 : i32
    scf.if %213 {
      %c0_91 = arith.constant 0 : index
      %c0_92 = arith.constant 0 : index
      %214 = vector.load %arg20[%c0_91, %c0_92] : memref<8x32xf32, #tpu.memory_space<vmem>>, vector<8x32xf32>
      %cst_93 = arith.constant dense<0.000000e+00> : vector<8xf32>
      %215 = vector.multi_reduction <add>, %214, %cst_93 [1] : vector<8x32xf32> to vector<8xf32>
      %216 = vector.shape_cast %215 : vector<8xf32> to vector<8x1xf32>
      %cst_94 = arith.constant 3.200000e+01 : f32
      %217 = vector.broadcast %cst_94 : f32 to vector<8x1xf32>
      %218 = arith.divf %216, %217 : vector<8x1xf32>
      %219 = vector.broadcast %218 : vector<8x1xf32> to vector<8x32xf32>
      %220 = arith.subf %214, %219 : vector<8x32xf32>
      %221 = arith.mulf %220, %220 : vector<8x32xf32>
      %cst_95 = arith.constant dense<0.000000e+00> : vector<8xf32>
      %222 = vector.multi_reduction <add>, %221, %cst_95 [1] : vector<8x32xf32> to vector<8xf32>
      %223 = vector.shape_cast %222 : vector<8xf32> to vector<8x1xf32>
      %cst_96 = arith.constant 3.200000e+01 : f32
      %224 = vector.broadcast %cst_96 : f32 to vector<8x1xf32>
      %225 = arith.divf %223, %224 : vector<8x1xf32>
      %226 = vector.broadcast %218 : vector<8x1xf32> to vector<8x32xf32>
      %227 = arith.subf %214, %226 : vector<8x32xf32>
      %cst_97 = arith.constant 9.99999974E-6 : f32
      %228 = vector.broadcast %cst_97 : f32 to vector<8x1xf32>
      %229 = arith.addf %225, %228 : vector<8x1xf32>
      %230 = math.rsqrt %229 : vector<8x1xf32>
      %231 = vector.broadcast %230 : vector<8x1xf32> to vector<8x32xf32>
      %232 = arith.mulf %227, %231 : vector<8x32xf32>
      %c0_98 = arith.constant 0 : index
      %c0_99 = arith.constant 0 : index
      %233 = vector.load %arg15[%c0_98, %c0_99] : memref<1x32xf32, #tpu.memory_space<vmem>>, vector<1x32xf32>
      %234 = vector.broadcast %233 : vector<1x32xf32> to vector<8x32xf32>
      %235 = arith.mulf %232, %234 : vector<8x32xf32>
      %c0_100 = arith.constant 0 : index
      %c0_101 = arith.constant 0 : index
      %236 = vector.load %arg16[%c0_100, %c0_101] : memref<1x32xf32, #tpu.memory_space<vmem>>, vector<1x32xf32>
      %237 = vector.broadcast %236 : vector<1x32xf32> to vector<8x32xf32>
      %238 = arith.addf %235, %237 : vector<8x32xf32>
      %c0_102 = arith.constant 0 : index
      %c0_103 = arith.constant 0 : index
      %239 = vector.load %arg17[%c0_102, %c0_103] : memref<32x128xf32, #tpu.memory_space<vmem>>, vector<32x128xf32>
      %cst_104 = arith.constant dense<0.000000e+00> : vector<8x128xf32>
      %240 = tpu.matmul %238, %239, %cst_104 {dimension_numbers = #tpu.dot_dimension_numbers<[1], [0], [0], [1], [0, 0, 1, 1], [], []>} : vector<8x32xf32>, vector<32x128xf32>, vector<8x128xf32> -> vector<8x128xf32>
      %c0_105 = arith.constant 0 : index
      %c0_106 = arith.constant 0 : index
      %241 = vector.load %arg18[%c0_105, %c0_106] : memref<1x128xf32, #tpu.memory_space<vmem>>, vector<1x128xf32>
      %242 = vector.broadcast %241 : vector<1x128xf32> to vector<8x128xf32>
      %243 = arith.addf %240, %242 : vector<8x128xf32>
      %c0_107 = arith.constant 0 : index
      %c0_108 = arith.constant 0 : index
      %c0_109 = arith.constant 0 : index
      %244 = vector.load %arg19[%c0_107, %c0_108, %c0_109] : memref<1x8x128xf32, #tpu.memory_space<vmem>>, vector<1x8x128xf32>
      %245 = vector.shape_cast %244 : vector<1x8x128xf32> to vector<8x128xf32>
      %246 = vector.shape_cast %243 : vector<8x128xf32> to vector<1x8x128xf32>
      tpu.vector_store %arg19[%c0_107, %c0_108, %c0_109], %246 {strides = array<i32>} : memref<1x8x128xf32, #tpu.memory_space<vmem>>, vector<1x8x128xf32>,
    } else {
    }
    return
  }
  func.func @transform_0(%arg0: i32, %arg1: i32) -> (i32, i32, i32) {
    %c0_i32 = arith.constant 0 : i32
    %c0_i32_0 = arith.constant 0 : i32
    %c0_i32_1 = arith.constant 0 : i32
    return %arg0, %c0_i32, %c0_i32_0 : i32, i32, i32
  }
  func.func @transform_1(%arg0: i32, %arg1: i32) -> (i32, i32, i32) {
    %c0_i32 = arith.constant 0 : i32
    %c0_i32_0 = arith.constant 0 : i32
    %c0_i32_1 = arith.constant 0 : i32
    return %arg0, %c0_i32, %c0_i32_0 : i32, i32, i32
  }
  func.func @transform_2(%arg0: i32, %arg1: i32) -> (i32, i32, i32) {
    %c0_i32 = arith.constant 0 : i32
    %c0_i32_0 = arith.constant 0 : i32
    %c0_i32_1 = arith.constant 0 : i32
    return %arg0, %c0_i32, %c0_i32_0 : i32, i32, i32
  }
  func.func @transform_3(%arg0: i32, %arg1: i32) -> (i32, i32, i32) {
    %c0_i32 = arith.constant 0 : i32
    %c0_i32_0 = arith.constant 0 : i32
    %c0_i32_1 = arith.constant 0 : i32
    return %arg1, %c0_i32, %c0_i32_0 : i32, i32, i32
  }
  func.func @transform_4(%arg0: i32, %arg1: i32) -> (i32, i32, i32) {
    %c0_i32 = arith.constant 0 : i32
    %c0_i32_0 = arith.constant 0 : i32
    %c0_i32_1 = arith.constant 0 : i32
    return %arg1, %c0_i32, %c0_i32_0 : i32, i32, i32
  }
  func.func @transform_5(%arg0: i32, %arg1: i32) -> (i32, i32, i32) {
    %c0_i32 = arith.constant 0 : i32
    %c0_i32_0 = arith.constant 0 : i32
    %c0_i32_1 = arith.constant 0 : i32
    return %arg1, %c0_i32, %c0_i32_0 : i32, i32, i32
  }
  func.func @transform_6(%arg0: i32, %arg1: i32) -> (i32, i32, i32) {
    %c0_i32 = arith.constant 0 : i32
    %c0_i32_0 = arith.constant 0 : i32
    %c0_i32_1 = arith.constant 0 : i32
    return %arg1, %c0_i32, %c0_i32_0 : i32, i32, i32
  }
  func.func @transform_7(%arg0: i32, %arg1: i32) -> (i32, i32, i32, i32) {
    %c0_i32 = arith.constant 0 : i32
    %c0_i32_0 = arith.constant 0 : i32
    %c0_i32_1 = arith.constant 0 : i32
    %c0_i32_2 = arith.constant 0 : i32
    return %arg1, %c0_i32, %c0_i32_0, %c0_i32_1 : i32, i32, i32, i32
  }
  func.func @transform_8(%arg0: i32, %arg1: i32) -> (i32, i32, i32) {
    %c0_i32 = arith.constant 0 : i32
    %c0_i32_0 = arith.constant 0 : i32
    %c0_i32_1 = arith.constant 0 : i32
    return %arg1, %c0_i32, %c0_i32_0 : i32, i32, i32
  }
  func.func @transform_9(%arg0: i32, %arg1: i32) -> (i32, i32, i32) {
    %c0_i32 = arith.constant 0 : i32
    %c0_i32_0 = arith.constant 0 : i32
    %c0_i32_1 = arith.constant 0 : i32
    return %arg1, %c0_i32, %c0_i32_0 : i32, i32, i32
  }
  func.func @transform_10(%arg0: i32, %arg1: i32) -> (i32, i32, i32) {
    %c0_i32 = arith.constant 0 : i32
    %c0_i32_0 = arith.constant 0 : i32
    %c0_i32_1 = arith.constant 0 : i32
    return %arg1, %c0_i32, %c0_i32_0 : i32, i32, i32
  }
  func.func @transform_11(%arg0: i32, %arg1: i32) -> (i32, i32, i32) {
    %c0_i32 = arith.constant 0 : i32
    %c0_i32_0 = arith.constant 0 : i32
    %c0_i32_1 = arith.constant 0 : i32
    return %arg1, %c0_i32, %c0_i32_0 : i32, i32, i32
  }
  func.func @transform_12(%arg0: i32, %arg1: i32) -> (i32, i32, i32) {
    %c0_i32 = arith.constant 0 : i32
    %c0_i32_0 = arith.constant 0 : i32
    %c0_i32_1 = arith.constant 0 : i32
    return %arg1, %c0_i32, %c0_i32_0 : i32, i32, i32
  }
  func.func @transform_13(%arg0: i32, %arg1: i32) -> (i32, i32) {
    %c0_i32 = arith.constant 0 : i32
    %c0_i32_0 = arith.constant 0 : i32
    %c0_i32_1 = arith.constant 0 : i32
    return %c0_i32, %c0_i32_0 : i32, i32
  }
  func.func @transform_14(%arg0: i32, %arg1: i32) -> (i32, i32) {
    %c0_i32 = arith.constant 0 : i32
    %c0_i32_0 = arith.constant 0 : i32
    %c0_i32_1 = arith.constant 0 : i32
    return %c0_i32, %c0_i32_0 : i32, i32
  }
  func.func @transform_15(%arg0: i32, %arg1: i32) -> (i32, i32) {
    %c0_i32 = arith.constant 0 : i32
    %c0_i32_0 = arith.constant 0 : i32
    %c0_i32_1 = arith.constant 0 : i32
    return %c0_i32, %c0_i32_0 : i32, i32
  }
  func.func @transform_16(%arg0: i32, %arg1: i32) -> (i32, i32) {
    %c0_i32 = arith.constant 0 : i32
    %c0_i32_0 = arith.constant 0 : i32
    %c0_i32_1 = arith.constant 0 : i32
    return %c0_i32, %c0_i32_0 : i32, i32
  }
  func.func @transform_17(%arg0: i32, %arg1: i32) -> (i32, i32, i32) {
    %c0_i32 = arith.constant 0 : i32
    %c0_i32_0 = arith.constant 0 : i32
    %c0_i32_1 = arith.constant 0 : i32
    return %arg0, %c0_i32, %c0_i32_0 : i32, i32, i32
  }
}

</mosaic_0001>

<bundles_post_ra>
// kernel: tpu_custom_call.1
= control target key start
LH: loop header
LB: loop body
LE: loop exit
PB: predicated region body
PF: predicated region fallthrough
CT: control target
= control target key end

     0   :  { %s4972_s0 = inlined_call_operand.hbm [shape: f32[2,8,32], index: 0, kind: input, shape index: {}]   ;;  %s4973_s1 = inlined_call_operand.hbm [shape: f32[2,1,32], index: 1, kind: input, shape index: {}]   ;;  %s4974_s2 = inlined_call_operand.hbm [shape: f32[2,1,8], index: 2, kind: input, shape index: {}]   ;;  %s4975_s3 = inlined_call_operand.hbm [shape: bf16[2,32,192], index: 3, kind: input, shape index: {}]   ;;  %s4976_s4 = inlined_call_operand.hbm [shape: f32[2,1,192], index: 4, kind: input, shape index: {}]   ;;  %s4977_s5 = inlined_call_operand.hbm [shape: bf16[2,32,96], index: 5, kind: input, shape index: {}]   ;;  %s4978_s6 = inlined_call_operand.hbm [shape: f32[2,1,96], index: 6, kind: input, shape index: {}]   ;;  %s4979_s7 = inlined_call_operand.hbm [shape: bf16[2,4,8,32], index: 7, kind: input, shape index: {}]   ;;  %s4980_s8 = inlined_call_operand.hbm [shape: f32[2,1,32], index: 8, kind: input, shape index: {}]   ;;  %s4981_s9 = inlined_call_operand.hbm [shape: bf16[2,32,128], index: 9, kind: input, shape index: {}]   ;;  %s4982_s10 = inlined_call_operand.hbm [shape: f32[2,1,128], index: 10, kind: input, shape index: {}]   ;;  %s4983_s11 = inlined_call_operand.hbm [shape: bf16[2,128,32], index: 11, kind: input, shape index: {}]   ;;  %s4984_s12 = inlined_call_operand.hbm [shape: f32[2,1,32], index: 12, kind: input, shape index: {}]   ;;  %s4985_s13 = inlined_call_operand.hbm [shape: f32[1,32], index: 13, kind: input, shape index: {}]   ;;  %s4986_s14 = inlined_call_operand.hbm [shape: f32[1,32], index: 14, kind: input, shape index: {}]   ;;  %s4987_s15 = inlined_call_operand.hbm [shape: f32[32,128], index: 15, kind: input, shape index: {}]   ;;  %s4988_s16 = inlined_call_operand.hbm [shape: f32[1,128], index: 16, kind: input, shape index: {}]   ;;  %s4989_s17 = inlined_call_operand.hbm [shape: f32[2,8,128], index: 17, kind: output, shape index: {}]  }
   0x1   :  { %5046 = sst [smem:[#allocation58_spill]] %s4972_s0 }
   0x2   :  { %5047 = sst [smem:[#allocation59_spill]] %s4973_s1 }
   0x3   :  { %5048 = sst [smem:[#allocation60_spill]] %s4975_s3 }
   0x4   :  { %5049 = sst [smem:[#allocation61_spill]] %s4976_s4 }
   0x5   :  { %5050 = sst [smem:[#allocation62_spill]] %s4977_s5 }
   0x6   :  { %5051 = sst [smem:[#allocation63_spill]] %s4978_s6 }
   0x7   :  { %5052 = sst [smem:[#allocation64_spill]] %s4979_s7 }
   0x8   :  { %5053 = sst [smem:[#allocation65_spill]] %s4980_s8 }
   0x9   :  { %5054 = sst [smem:[#allocation66_spill]] %s4981_s9 }
   0xa   :  { %5055 = sst [smem:[#allocation67_spill]] %s4982_s10 }
   0xb   :  { %5056 = sst [smem:[#allocation68_spill]] %s4984_s12 }
   0xc   :  { %5057 = sst [smem:[#allocation69_spill]] %s4985_s13 }
   0xd   :  { %5058 = sst [smem:[#allocation70_spill]] %s4986_s14 }
   0xe   :  { %5059 = sst [smem:[#allocation71_spill]] %s4987_s15 }
   0xf   :  { %5060 = sst [smem:[#allocation72_spill]] %s4988_s16 }
  0x10   :  { %5061 = sst [smem:[#allocation73_spill]] %s4989_s17 }
  0x11   :  { %22 = vsyncpa [#allocation4], 0 }
  0x12   :  { %24 = vsyncpa [#allocation4 + $0x1], 0 }
  0x13   :  { %25 = vsyncpa [#allocation7], 0 }
  0x14   :  { %27 = vsyncpa [#allocation7 + $0x1], 0 }
  0x15   :  { %28 = vsyncpa [#allocation10], 0 }
  0x16   :  { %30 = vsyncpa [#allocation10 + $0x1], 0 }
  0x17   :  { %31 = vsyncpa [#allocation13], 0 }
  0x18   :  { %33 = vsyncpa [#allocation13 + $0x1], 0 }
  0x19   :  { %34 = vsyncpa [#allocation16], 0 }
  0x1a   :  { %36 = vsyncpa [#allocation16 + $0x1], 0 }
  0x1b   :  { %37 = vsyncpa [#allocation19], 0 }
  0x1c   :  { %39 = vsyncpa [#allocation19 + $0x1], 0 }
  0x1d   :  { %40 = vsyncpa [#allocation22], 0 }
  0x1e   :  { %42 = vsyncpa [#allocation22 + $0x1], 0 }
  0x1f   :  { %43 = vsyncpa [#allocation25], 0 }
  0x20   :  { %44 = vsyncpa [#allocation28], 0 }
  0x21   :  { %45 = vsyncpa [#allocation5], 0 }
  0x22   :  { %47 = vsyncpa [#allocation5 + $0x1], 0  ;;  %s3949_s24 = smov 0   ;;  %s3951_s25 = smov 0  }
  0x23   :  { %s3953_s26 = smov 0   ;;  %s3955_s27 = smov 0  }
  0x24   :  { %s3957_s28 = smov 0   ;;  %s3959_s29 = smov 0  }
  0x25   :  { %s3961_s0 = smov 0   ;;  %s3963_s30 = smov 0  }
  0x26   :  { %s3965_s18 = smov 0   ;;  %s3967_s19 = smov 0  }
  0x27   :  { %s3969_s1 = smov 0  }
  0x28 LB: > { %5062 = sst [smem:[#allocation41_spill]] %s3781_s25  ;;  %s4005_s20 = sadd.s32 4294967295, %s3817_s1   ;;  %s3817_s1 = sphi %s3969_s1, %s53_s1   ;;  %s3813_s19 = sphi %s3967_s19, %s5177_s19   ;;  %s3809_s18 = sphi %s3965_s18, %s5176_s18   ;;  %s3805_s30 = sphi %s3963_s30, %s5175_s30   ;;  %s3801_s0 = sphi %s3961_s0, %s5174_s0   ;;  %s3797_s29 = sphi %s3959_s29, %s5169_s29   ;;  %s3793_s28 = sphi %s3957_s28, %s5173_s28   ;;  %s3789_s27 = sphi %s3955_s27, %s5172_s27   ;;  %s3785_s26 = sphi %s3953_s26, %s5167_s26   ;;  %s3781_s25 = sphi %s3951_s25, %s5166_s25   ;;  %s3777_s24 = sphi %s3949_s24, %s5165_s24  }
  0x29   : > { %5063 = sst [smem:[#allocation42_spill]] %s3785_s26  ;;  %p2625_p0 = scmp.ge.s32.totalorder %s3817_s1, 1 }
  0x2a   : > { %5064 = sst [smem:[#allocation43_spill]] %s3789_s27  ;;  %p4999_p1 = scmp.eq.s32.totalorder %s4005_s20, 0 }
  0x2b   : > { %5065 = sst [smem:[#allocation44_spill]] %s3797_s29  ;;  %p518_p2 = scmp.lt.s32.totalorder %s3817_s1, 5 }
  0x2c   : > { %5066 = sst [smem:[#allocation45_spill]] %s3801_s0  ;;  %s3819_s22 = smov [#allocation24]  }
  0x2d   : > { %5067 = sst [smem:[#allocation46_spill]] %s3805_s30  ;;  %p4010_p3 = pnand %p2625_p0, %p518_p2 }
  0x2e   : > { %5068 = sst [smem:[#allocation47_spill]] %s3817_s1  ;;  %s531_s23 = sshll.u32 %s3819_s22, 4  ;;  %s532_s23 = int_to_ptr.vmem [resolvable:$true] %s531_s23 }
  0x2f   : > { %5069 = sst [smem:[#allocation48_spill]] %s4005_s20  ;;  %p2938_p4 = pneg %p4010_p3 }
  0x30   : > { %s5070_s21 = scalar_select %p4010_p3, 1, 0 }
  0x31   : > { %s3820_s17 = smov [#allocation27]   ;;  %p4018_p5 = pnand %p2938_p4, %p4999_p1 }
  0x32   : > { %5071 = sst [smem:[#allocation49_spill]] %s5070_s21  ;;  %s552_s30 = sshll.u32 %s3820_s17, 4  ;;  %s4022_s30 = int_to_ptr.vmem [resolvable:$true] %s552_s30 }
  0x33   : > { %s5072_s0 = scalar_select %p4018_p5, 1, 0 }
  0x34   : > { %s5073_s13 = sld [smem:[#allocation69_spill]]  ;;  %p4032_p7 = pneg %p4018_p5 }
  0x36   : > { %s5074_s22 = scalar_select %p4032_p7, 1, 0 }
  0x3a   : > { %s3161_s8 = scalar_lea.hbm %s5073_s13, 16 }
  0x3b   : > { %p3162_p6 = scmp.ne.s32.totalorder %s5073_s13, %s3161_s8  ;;  %p3168_p10 = scmp.lt.u32.totalorder %s3161_s8, %s5073_s13 }
  0x3d   : > { %p3164_p8 = pnand %p4032_p7, %p3162_p6 }
  0x3f   : > { %p3165_p9 = pneg %p3164_p8 }
  0x41   : > { %p3170_p11 = pnand %p3168_p10, %p3165_p9 }
  0x43   : > { %3173 = shalt.err (!%p3170_p11)
}
  0x44   : > { %s3174_s10 = scalar_lea.vmem %s532_s23, 16  ;;  %s3181_s4 = scalar_lea.vmem %s532_s23, 32 }
  0x45   : > { %p3175_p12 = scmp.ne.s32.totalorder %s532_s23, %s3174_s10  ;;  %p3182_p2 = scmp.lt.s32.totalorder %s532_s23, %s532_s23 }
  0x46   : > { %p3183_p4 = scmp.lt.s32.totalorder %s3181_s4, %s3174_s10 }
  0x47   : > { %p3177_p13 = pnand %p3175_p12, %p4032_p7 }
  0x48   : > { %p3184_p1 = por %p3183_p4, %p3182_p2 }
  0x49   : > { %p3178_p0 = pneg %p3177_p13 }
  0x4b   : > { %p3185_p3 = pnand %p3184_p1, %p3178_p0 }
  0x4d   : > { %3188 = shalt.err (!%p3185_p3)
}
  0x4e   : > { %2941 = dma.hbm_to_vmem [thread:$0]  (!%p4018_p5), %s5073_s13, 16, %s532_s23, [#allocation25]  }
  0x4f   : > { %s5075_s15 = sld [smem:[#allocation71_spill]] }
  0x55   : > { %s3189_s17 = scalar_lea.hbm %s5075_s15, 512 }
  0x56   : > { %p3190_p6 = scmp.ne.s32.totalorder %s5075_s15, %s3189_s17  ;;  %p3196_p1 = scmp.lt.u32.totalorder %s3189_s17, %s5075_s15 }
  0x58   : > { %p3192_p8 = pnand %p3190_p6, %p4032_p7 }
  0x5a   : > { %p3193_p9 = pneg %p3192_p8 }
  0x5c   : > { %p3198_p3 = pnand %p3196_p1, %p3193_p9 }
  0x5e   : > { %3201 = shalt.err (!%p3198_p3)
}
  0x5f   : > { %s3202_s23 = scalar_lea.vmem %s4022_s30, 512  ;;  %p3210_p13 = scmp.lt.s32.totalorder %s4022_s30, %s4022_s30 }
  0x60   : > { %p3203_p10 = scmp.ne.s32.totalorder %s4022_s30, %s3202_s23  ;;  %p3211_p0 = scmp.lt.s32.totalorder %s3202_s23, %s3202_s23 }
  0x62   : > { %p3205_p11 = pnand %p3203_p10, %p4032_p7  ;;  %p3212_p2 = por %p3211_p0, %p3210_p13 }
  0x64   : > { %p3206_p12 = pneg %p3205_p11 }
  0x66   : > { %p3213_p4 = pnand %p3212_p2, %p3206_p12 }
  0x68   : > { %3216 = shalt.err (!%p3213_p4)
}
  0x69   : > { %s5003_s14 = smov 128   ;;  %s5004_s16 = smov 8  }
  0x6a   : > { %2947 = dma.hbm_to_vmem [thread:$0]  (!%p4018_p5), %s5075_s15, 512, %s4022_s30, [#allocation28], %s5003_s14, %s5003_s14, %s5004_s16  }
  0x6b   : > { %s2624_s8 = sadd.s32 4294967294, %s3817_s1   ;;  %s62_s21 = sadd.s32 1, %s3809_s18 }
  0x6c   : > { %p63_p6 = scmp.ge.s32.totalorder %s62_s21, 2  ;;  %s65_s17 = sadd.s32 1, %s3813_s19 }
  0x6d   : > { %s72_s10 = sadd.s32 1, %s3797_s29  ;;  %p5006_p8 = scmp.ne.s32.totalorder %s3797_s29, %s3793_s28 }
  0x6e   : > { %s5179_s21 = smov (%p63_p6, %s62_s21), 0  ;;  %s5181_s17 = smov (!%p63_p6, %s65_s17), %s3813_s19 }
  0x6f   : > { %5076 = sst [smem:[#allocation50_spill]] %s5179_s21  ;;  %p80_p9 = scmp.eq.s32.totalorder %s3817_s1, 0 }
  0x70   : > { %p5005_p1 = scmp.ne.s32.totalorder %s3793_s28, %s3789_s27  ;;  %p67_p3 = scmp.ge.s32.totalorder %s5181_s17, 2 }
  0x71   : > { %s147_s30 = ssub.s32 %s3809_s18, %s5179_s21  ;;  %p4093_p10 = por %p80_p9, %p5006_p8 }
  0x72   : > { %p5078_p11 = scmp.eq.s32.totalorder %s4005_s20, 0  ;;  %s5183_s17 = smov (%p67_p3, %s5181_s17), 0 }
  0x73   : > { %5081 = sst [smem:[#allocation52_spill]] %s5183_s17  ;;  %p148_p13 = scmp.eq.s32.totalorder %s147_s30, 0 }
  0x74   : > { %p4102_p12 = por %p5078_p11, %p5005_p1  ;;  %s150_s6 = sadd.s32 1, %s3785_s26 }
  0x75   : > { %s69_s12 = ssub.s32 %s3813_s19, %s5183_s17  ;;  %p157_p0 = scmp.ne.s32.totalorder %s3785_s26, %s3781_s25 }
  0x76   : > { %s5079_s23 = scalar_select %p4102_p12, 1, 0 }
  0x77   : > { %p70_p2 = scmp.eq.s32.totalorder %s69_s12, 0  ;;  %p163_p4 = scmp.ne.s32.totalorder %s3781_s25, %s3777_s24 }
  0x78   : > { %5080 = sst [smem:[#allocation51_spill]] %s5079_s23  ;;  %p4123_p6 = por %p157_p0, %p80_p9 }
  0x79   : > { %s4116_s14 = scalar_select %p148_p13, %s3785_s26, %s150_s6  }
  0x7a   : > { %s4119_s16 = scalar_select %p70_p2, %s3797_s29, %s72_s10  }
  0x7b   : > { %5082 = sst [smem:[#allocation53_spill]] %s4116_s14  ;;  %p5085_p3 = pmov %p5078_p11 }
  0x7c   : > { %5083 = sst [smem:[#allocation54_spill]] %s4119_s16  ;;  %p505_p1 = scmp.eq.s32.totalorder %s4005_s20, 3 }
  0x7d   : > { %s5084_s13 = scalar_select %p4123_p6, 1, 0 }
  0x7e   : > { %p4129_p11 = por %p163_p4, %p5085_p3  ;;  %p511_p8 = scmp.eq.s32.totalorder %s2624_s8, 3 }
  0x7f   : > { %p5024_p12 = scmp.lt.s32.totalorder %s3817_s1, 4  ;;  %s4136_s15 = sand.u32 1, %s3797_s29  }
  0x80   : > { %s5086_s30 = scalar_select %p4129_p11, 1, 0 }
  0x81   : > { %p5088_p5 = scmp.ne.s32.totalorder %s3797_s29, %s3793_s28  ;;  %p5091_p9 = scmp.ne.s32.totalorder %s3793_s28, %s3789_s27 }
  0x82   : > { %5087 = sst [smem:[#allocation55_spill]] %s5086_s30  ;;  %p4156_p2 = pnand %p5024_p12, %p4093_p10 }
  0x83   : > { %p4141_p13 = por %p505_p1, %p5088_p5  ;;  %p4148_p0 = por %p511_p8, %p5091_p9 }
  0x84   : > { %s5094_s6 = scalar_select %p4156_p2, 1, 0 }
  0x85   : > { %s5089_s24 = scalar_select %p4141_p13, 1, 0 }
  0x86   : > { %s5092_s10 = scalar_select %p4148_p0, 1, 0 }
  0x87   : > { %5090 = sst [smem:[#allocation56_spill]] %s5089_s24  ;;  %s4161_s8 = sand.u32 1, %s3817_s1  }
  0x88   : > { %5093 = sst [smem:[#allocation57_spill]] %s5092_s10  ;;  %s2633_s12 = sshll.u32 %s3813_s19, 4 }
  0x89   : > { %s5095_s16 = sld [smem:[#allocation59_spill]]  ;;  %s598_s4 = scalar_lea.vmem [#allocation6], %s4136_s15 }
  0x8a   : > { %s605_s14 = sshll.u32 %s598_s4, 4  ;;  %s4175_s24 = scalar_lea.hbm %s4974_s2, %s2633_s12  ;;  %s4170_s14 = int_to_ptr.vmem [resolvable:$true] %s605_s14 }
  0x8b   : > { %s5030_s30 = scalar_lea.sflag [#allocation7], %s4161_s8  ;;  %p4182_p8 = pneg %p4156_p2 }
  0x8d   : > { %s5096_s21 = scalar_select %p4182_p8, 1, 0 }
  0x8f   : > { %s4167_s29 = scalar_lea.hbm %s5095_s16, %s2633_s12  ;;  %s3222_s20 = scalar_lea.hbm %s5095_s16, 32 }
  0x90   : > { %s3217_s25 = scalar_lea.hbm %s4167_s29, 16  ;;  %p3223_p4 = scmp.lt.u32.totalorder %s4167_s29, %s5095_s16 }
  0x91   : > { %p3218_p5 = scmp.ne.s32.totalorder %s4167_s29, %s3217_s25  ;;  %p3224_p3 = scmp.lt.u32.totalorder %s3222_s20, %s3217_s25 }
  0x92   : > { %p3226_p12 = scmp.lt.u32.totalorder %s3217_s25, %s4167_s29 }
  0x93   : > { %p3220_p1 = pnand %p4182_p8, %p3218_p5  ;;  %p3225_p9 = por %p3224_p3, %p3223_p4 }
  0x95   : > { %p3221_p10 = pneg %p3220_p1  ;;  %p3227_p0 = por %p3226_p12, %p3225_p9 }
  0x97   : > { %p3228_p13 = pnand %p3227_p0, %p3221_p10 }
  0x99   : > { %3231 = shalt.err (!%p3228_p13)
}
  0x9a   : > { %s3232_s10 = scalar_lea.vmem %s4170_s14, 16  ;;  %s3823_s12 = smov [#allocation6]  }
  0x9b   : > { %p3233_p5 = scmp.ne.s32.totalorder %s4170_s14, %s3232_s10  ;;  %s3237_s17 = sshll.u32 %s3823_s12, 4  ;;  %s3238_s17 = int_to_ptr.vmem [resolvable:$false] %s3237_s17 }
  0x9c   : > { %s3239_s23 = scalar_lea.vmem %s3238_s17, 32  ;;  %p3240_p7 = scmp.lt.s32.totalorder %s4170_s14, %s3238_s17 }
  0x9d   : > { %p3235_p1 = pnand %p3233_p5, %p4182_p8  ;;  %p3241_p6 = scmp.lt.s32.totalorder %s3239_s23, %s3232_s10 }
  0x9f   : > { %p3236_p11 = pneg %p3235_p1  ;;  %p3242_p4 = por %p3241_p6, %p3240_p7 }
  0xa1   : > { %p3243_p3 = pnand %p3242_p4, %p3236_p11 }
  0xa3   : > { %3246 = shalt.err (!%p3243_p3)
}
  0xa4   : > { %2957 = dma.hbm_to_vmem [thread:$0]  (!%p4156_p2), %s4167_s29, 16, %s4170_s14, %s5030_s30  }
  0xa5   : > { %s4208_s25 = sand.u32 1, %s3785_s26   ;;  %p5097_p12 = scmp.ne.s32.totalorder %s5084_s13, 0 }
  0xa6   : > { %p5098_p13 = scmp.lt.s32.totalorder %s3817_s1, 4  ;;  %s2635_s4 = sshll.u32 %s4208_s25, 5 }
  0xa7   : > { %s2719_s27 = sshll.u32 %s3809_s18, 9  ;;  %s633_s10 = scalar_lea.vmem [#allocation9], %s2635_s4 }
  0xa8   : > { %p4214_p7 = pnand %p5098_p13, %p5097_p12  ;;  %s640_s12 = sshll.u32 %s633_s10, 4  ;;  %s4225_s12 = int_to_ptr.vmem [resolvable:$true] %s640_s12 }
  0xa9   : > { %s5100_s3 = sld [smem:[#allocation60_spill]]  ;;  %s5036_s13 = scalar_lea.sflag [#allocation10], %s4161_s8 }
  0xaa   : > { %s5099_s20 = scalar_select %p4214_p7, 1, 0 }
  0xab   : > { %p4232_p11 = pneg %p4214_p7 }
  0xad   : > { %s5101_s14 = scalar_select %p4232_p11, 1, 0 }
  0xaf   : > { %s4223_s16 = scalar_lea.hbm %s5100_s3, %s2719_s27  ;;  %s3252_s10 = scalar_lea.hbm %s5100_s3, 1024 }
  0xb0   : > { %s3247_s29 = scalar_lea.hbm %s4223_s16, 512  ;;  %p3253_p9 = scmp.lt.u32.totalorder %s4223_s16, %s5100_s3 }
  0xb1   : > { %p3248_p6 = scmp.ne.s32.totalorder %s4223_s16, %s3247_s29  ;;  %p3254_p5 = scmp.lt.u32.totalorder %s3252_s10, %s3247_s29 }
  0xb2   : > { %p3256_p4 = scmp.lt.u32.totalorder %s3247_s29, %s4223_s16 }
  0xb3   : > { %p3250_p0 = pnand %p4232_p11, %p3248_p6  ;;  %p3255_p1 = por %p3254_p5, %p3253_p9 }
  0xb5   : > { %p3251_p10 = pneg %p3250_p0  ;;  %p3257_p3 = por %p3256_p4, %p3255_p1 }
  0xb7   : > { %p3258_p12 = pnand %p3257_p3, %p3251_p10 }
  0xb9   : > { %3261 = shalt.err (!%p3258_p12)
}
  0xba   : > { %s3262_s30 = scalar_lea.vmem %s4225_s12, 512  ;;  %s3824_s4 = smov [#allocation9]  }
  0xbb   : > { %p3263_p13 = scmp.ne.s32.totalorder %s4225_s12, %s3262_s30  ;;  %s3267_s27 = sshll.u32 %s3824_s4, 4  ;;  %s3268_s27 = int_to_ptr.vmem [resolvable:$false] %s3267_s27 }
  0xbc   : > { %s3269_s17 = scalar_lea.vmem %s3268_s27, 1024  ;;  %p3270_p2 = scmp.lt.s32.totalorder %s4225_s12, %s3268_s27 }
  0xbd   : > { %p3265_p6 = pnand %p3263_p13, %p4232_p11  ;;  %p3271_p8 = scmp.lt.s32.totalorder %s3269_s17, %s3262_s30 }
  0xbf   : > { %p3266_p0 = pneg %p3265_p6  ;;  %p3272_p9 = por %p3271_p8, %p3270_p2 }
  0xc1   : > { %p3273_p5 = pnand %p3272_p9, %p3266_p0 }
  0xc3   : > { %3276 = shalt.err (!%p3273_p5)
}
  0xc4   : > { %s5102_s29 = smov 8   ;;  %s5103_s10 = smov 128  }
  0xc5   : > { %2963 = dma.hbm_to_vmem [thread:$0]  (!%p4214_p7), %s4223_s16, 512, %s4225_s12, %s5036_s13, %s5103_s10, %s5103_s10, %s5102_s29  }
  0xc6   : > { %s4261_s23 = sshll.u32 %s4208_s25, 4  ;;  %s4264_s30 = sshll.u32 %s3809_s18, 8 }
  0xc7   : > { %s5104_s5 = sld [smem:[#allocation62_spill]]  ;;  %s673_s3 = scalar_lea.vmem [#allocation12], %s4261_s23 }
  0xc8   : > { %s680_s26 = sshll.u32 %s673_s3, 4  ;;  %s5039_s16 = scalar_lea.sflag [#allocation13], %s4161_s8  ;;  %s4273_s26 = int_to_ptr.vmem [resolvable:$true] %s680_s26 }
  0xcd   : > { %s4270_s17 = scalar_lea.hbm %s5104_s5, %s4264_s30  ;;  %s3282_s4 = scalar_lea.hbm %s5104_s5, 512 }
  0xce   : > { %s3277_s12 = scalar_lea.hbm %s4270_s17, 256  ;;  %p3283_p1 = scmp.lt.u32.totalorder %s4270_s17, %s5104_s5 }
  0xcf   : > { %p3278_p2 = scmp.ne.s32.totalorder %s4270_s17, %s3277_s12  ;;  %p3284_p4 = scmp.lt.u32.totalorder %s3282_s4, %s3277_s12 }
  0xd0   : > { %p3286_p12 = scmp.lt.u32.totalorder %s3277_s12, %s4270_s17 }
  0xd1   : > { %p3280_p8 = pnand %p3278_p2, %p4232_p11  ;;  %p3285_p3 = por %p3284_p4, %p3283_p1 }
  0xd3   : > { %p3281_p10 = pneg %p3280_p8  ;;  %p3287_p13 = por %p3286_p12, %p3285_p3 }
  0xd5   : > { %p3288_p6 = pnand %p3287_p13, %p3281_p10 }
  0xd7   : > { %3291 = shalt.err (!%p3288_p6)
}
  0xd8   : > { %s3292_s3 = scalar_lea.vmem %s4273_s26, 256  ;;  %s3825_s29 = smov [#allocation12]  }
  0xd9   : > { %p3293_p0 = scmp.ne.s32.totalorder %s4273_s26, %s3292_s3  ;;  %s3297_s10 = sshll.u32 %s3825_s29, 4  ;;  %s3298_s10 = int_to_ptr.vmem [resolvable:$false] %s3297_s10 }
  0xda   : > { %s3299_s13 = scalar_lea.vmem %s3298_s10, 512  ;;  %p3300_p2 = scmp.lt.s32.totalorder %s4273_s26, %s3298_s10 }
  0xdb   : > { %p3295_p9 = pnand %p3293_p0, %p4232_p11  ;;  %p3301_p8 = scmp.lt.s32.totalorder %s3299_s13, %s3292_s3 }
  0xdd   : > { %p3296_p5 = pneg %p3295_p9  ;;  %p3302_p1 = por %p3301_p8, %p3300_p2 }
  0xdf   : > { %p3303_p4 = pnand %p3302_p1, %p3296_p5 }
  0xe1   : > { %3306 = shalt.err (!%p3303_p4)
}
  0xe2   : > { %s3826_s12 = smov 64   ;;  %s3827_s4 = smov 4  }
  0xe3   : > { %2969 = dma.hbm_to_vmem [thread:$0]  (!%p4214_p7), %s4270_s17, 256, %s4273_s26, %s5039_s16, %s3826_s12, %s3826_s12, %s3827_s4  }
  0xe4   : > { %s5105_s7 = sld [smem:[#allocation64_spill]]  ;;  %s711_s10 = scalar_lea.vmem [#allocation15], %s4261_s23 }
  0xe5   : > { %s718_s13 = sshll.u32 %s711_s10, 4  ;;  %s5040_s5 = scalar_lea.sflag [#allocation16], %s4161_s8  ;;  %s4309_s13 = int_to_ptr.vmem [resolvable:$true] %s718_s13 }
  0xea   : > { %s4306_s29 = scalar_lea.hbm %s5105_s7, %s4264_s30  ;;  %s3312_s27 = scalar_lea.hbm %s5105_s7, 512 }
  0xeb   : > { %s3307_s1 = scalar_lea.hbm %s4306_s29, 256  ;;  %p3313_p13 = scmp.lt.u32.totalorder %s4306_s29, %s5105_s7 }
  0xec   : > { %p3308_p10 = scmp.ne.s32.totalorder %s4306_s29, %s3307_s1  ;;  %p3314_p6 = scmp.lt.u32.totalorder %s3312_s27, %s3307_s1 }
  0xed   : > { %p3316_p9 = scmp.lt.u32.totalorder %s3307_s1, %s4306_s29 }
  0xee   : > { %p3310_p3 = pnand %p3308_p10, %p4232_p11  ;;  %p3315_p0 = por %p3314_p6, %p3313_p13 }
  0xf0   : > { %p3311_p12 = pneg %p3310_p3  ;;  %p3317_p5 = por %p3316_p9, %p3315_p0 }
  0xf2   : > { %p3318_p2 = pnand %p3317_p5, %p3311_p12 }
  0xf4   : > { %3321 = shalt.err (!%p3318_p2)
}
  0xf5   : > { %s3322_s10 = scalar_lea.vmem %s4309_s13, 256  ;;  %s3828_s26 = smov [#allocation15]  }
  0xf6   : > { %p3323_p8 = scmp.ne.s32.totalorder %s4309_s13, %s3322_s10  ;;  %s3327_s17 = sshll.u32 %s3828_s26, 4  ;;  %s3328_s17 = int_to_ptr.vmem [resolvable:$false] %s3327_s17 }
  0xf7   : > { %s3329_s16 = scalar_lea.vmem %s3328_s17, 512  ;;  %p3330_p10 = scmp.lt.s32.totalorder %s4309_s13, %s3328_s17 }
  0xf8   : > { %p3325_p1 = pnand %p3323_p8, %p4232_p11  ;;  %p3331_p3 = scmp.lt.s32.totalorder %s3329_s16, %s3322_s10 }
  0xfa   : > { %p3326_p4 = pneg %p3325_p1  ;;  %p3332_p13 = por %p3331_p3, %p3330_p10 }
  0xfc   : > { %p3333_p6 = pnand %p3332_p13, %p3326_p4 }
  0xfe   : > { %3336 = shalt.err (!%p3333_p6)
}
  0xff   : > { %2975 = dma.hbm_to_vmem [thread:$0]  (!%p4214_p7), %s4306_s29, 256, %s4309_s13, %s5040_s5, %s3826_s12, %s3826_s12, %s3827_s4  }
 0x100   : > { %s5106_s9 = sld [smem:[#allocation66_spill]]  ;;  %s749_s10 = scalar_lea.vmem [#allocation18], %s4261_s23 }
 0x101   : > { %s756_s26 = sshll.u32 %s749_s10, 4  ;;  %s5041_s17 = scalar_lea.sflag [#allocation19], %s4161_s8  ;;  %s4345_s26 = int_to_ptr.vmem [resolvable:$true] %s756_s26 }
 0x106   : > { %s4342_s3 = scalar_lea.hbm %s5106_s9, %s4264_s30  ;;  %s3342_s1 = scalar_lea.hbm %s5106_s9, 512 }
 0x107   : > { %s3337_s16 = scalar_lea.hbm %s4342_s3, 256  ;;  %p3343_p5 = scmp.lt.u32.totalorder %s4342_s3, %s5106_s9 }
 0x108   : > { %p3338_p12 = scmp.ne.s32.totalorder %s4342_s3, %s3337_s16  ;;  %p3344_p2 = scmp.lt.u32.totalorder %s3342_s1, %s3337_s16 }
 0x109   : > { %p3346_p1 = scmp.lt.u32.totalorder %s3337_s16, %s4342_s3 }
 0x10a   : > { %p3340_p0 = pnand %p3338_p12, %p4232_p11  ;;  %p3345_p8 = por %p3344_p2, %p3343_p5 }
 0x10c   : > { %p3341_p9 = pneg %p3340_p0  ;;  %p3347_p4 = por %p3346_p1, %p3345_p8 }
 0x10e   : > { %p3348_p10 = pnand %p3347_p4, %p3341_p9 }
 0x110   : > { %3351 = shalt.err (!%p3348_p10)
}
 0x111   : > { %s3352_s23 = scalar_lea.vmem %s4345_s26, 256  ;;  %s3829_s10 = smov [#allocation18]  }
 0x112   : > { %p3353_p3 = scmp.ne.s32.totalorder %s4345_s26, %s3352_s23  ;;  %s3357_s29 = sshll.u32 %s3829_s10, 4  ;;  %s3358_s29 = int_to_ptr.vmem [resolvable:$false] %s3357_s29 }
 0x113   : > { %s3359_s13 = scalar_lea.vmem %s3358_s29, 512  ;;  %p3360_p12 = scmp.lt.s32.totalorder %s4345_s26, %s3358_s29 }
 0x114   : > { %p3355_p13 = pnand %p3353_p3, %p4232_p11  ;;  %p3361_p0 = scmp.lt.s32.totalorder %s3359_s13, %s3352_s23 }
 0x116   : > { %p3356_p6 = pneg %p3355_p13  ;;  %p3362_p5 = por %p3361_p0, %p3360_p12 }
 0x118   : > { %p3363_p2 = pnand %p3362_p5, %p3356_p6 }
 0x11a   : > { %3366 = shalt.err (!%p3363_p2)
}
 0x11b   : > { %2981 = dma.hbm_to_vmem [thread:$0]  (!%p4214_p7), %s4342_s3, 256, %s4345_s26, %s5041_s17, %s3826_s12, %s3826_s12, %s3827_s4  }
 0x11c   : > { %s2653_s16 = sshll.u32 %s4208_s25, 6  ;;  %s2724_s1 = sshll.u32 %s3809_s18, 10 }
 0x11d   : > { %s4379_s23 = scalar_lea.hbm %s4983_s11, %s2724_s1  ;;  %s787_s10 = scalar_lea.vmem [#allocation21], %s2653_s16 }
 0x11e   : > { %s794_s29 = sshll.u32 %s787_s10, 4  ;;  %s3830_s13 = smov [#allocation26]   ;;  %s4381_s29 = int_to_ptr.vmem [resolvable:$true] %s794_s29 }
 0x11f   : > { %s4383_s5 = sshll.u32 %s3830_s13, 4  ;;  %s784_s7 = scalar_lea.sflag [#allocation22], %s4161_s8  ;;  %s543_s5 = int_to_ptr.vmem [resolvable:$true] %s4383_s5 }
 0x120   : > { %s3367_s3 = scalar_lea.hbm %s4379_s23, 1024  ;;  %s3372_s30 = scalar_lea.hbm %s4983_s11, 2048 }
 0x121   : > { %p3368_p9 = scmp.ne.s32.totalorder %s4379_s23, %s3367_s3  ;;  %p3373_p4 = scmp.lt.u32.totalorder %s4379_s23, %s4983_s11 }
 0x122   : > { %p3374_p10 = scmp.lt.u32.totalorder %s3372_s30, %s3367_s3  ;;  %p3376_p13 = scmp.lt.u32.totalorder %s3367_s3, %s4379_s23 }
 0x123   : > { %p3370_p8 = pnand %p3368_p9, %p4232_p11 }
 0x124   : > { %p3375_p3 = por %p3374_p10, %p3373_p4 }
 0x125   : > { %p3371_p1 = pneg %p3370_p8 }
 0x126   : > { %p3377_p6 = por %p3376_p13, %p3375_p3 }
 0x128   : > { %p3378_p12 = pnand %p3377_p6, %p3371_p1 }
 0x12a   : > { %3381 = shalt.err (!%p3378_p12)
}
 0x12b   : > { %s3382_s16 = scalar_lea.vmem %s4381_s29, 1024  ;;  %s3831_s10 = smov [#allocation21]  }
 0x12c   : > { %p3383_p0 = scmp.ne.s32.totalorder %s4381_s29, %s3382_s16  ;;  %s3387_s13 = sshll.u32 %s3831_s10, 4  ;;  %s3388_s13 = int_to_ptr.vmem [resolvable:$false] %s3387_s13 }
 0x12d   : > { %s3389_s17 = scalar_lea.vmem %s3388_s13, 2048  ;;  %p3390_p9 = scmp.lt.s32.totalorder %s4381_s29, %s3388_s13 }
 0x12e   : > { %p3385_p5 = pnand %p3383_p0, %p4232_p11  ;;  %p3391_p8 = scmp.lt.s32.totalorder %s3389_s17, %s3382_s16 }
 0x130   : > { %p3386_p2 = pneg %p3385_p5  ;;  %p3392_p4 = por %p3391_p8, %p3390_p9 }
 0x132   : > { %p3393_p10 = pnand %p3392_p4, %p3386_p2 }
 0x134   : > { %3396 = shalt.err (!%p3393_p10)
}
 0x135   : > { %2987 = dma.hbm_to_vmem [thread:$0]  (!%p4214_p7), %s4379_s23, 1024, %s4381_s29, %s784_s7, %s3826_s12, %s3826_s12, %s3827_s4  }
 0x136   : > { %s5107_s1 = sld [smem:[#allocation70_spill]]  ;;  %p5109_p3 = scmp.ne.s32.totalorder %s5074_s22, 0 }
 0x13c   : > { %s5108_s10 = smov %s5107_s1  ;;  %s3397_s30 = scalar_lea.hbm %s5107_s1, 16 }
 0x13d   : > { %p3398_p1 = scmp.ne.s32.totalorder %s5108_s10, %s3397_s30  ;;  %p3404_p12 = scmp.lt.u32.totalorder %s3397_s30, %s5108_s10 }
 0x13f   : > { %p3400_p13 = pnand %p3398_p1, %p5109_p3 }
 0x141   : > { %p3401_p6 = pneg %p3400_p13 }
 0x143   : > { %p3406_p0 = pnand %p3404_p12, %p3401_p6 }
 0x145   : > { %3409 = shalt.err (!%p3406_p0)
}
 0x146   : > { %s3410_s9 = scalar_lea.vmem %s543_s5, 16  ;;  %s3417_s12 = scalar_lea.vmem %s543_s5, 32 }
 0x147   : > { %p3411_p5 = scmp.ne.s32.totalorder %s543_s5, %s3410_s9  ;;  %p3418_p8 = scmp.lt.s32.totalorder %s543_s5, %s543_s5 }
 0x148   : > { %p3419_p4 = scmp.lt.s32.totalorder %s3417_s12, %s3410_s9 }
 0x149   : > { %p3413_p2 = pnand %p3411_p5, %p5109_p3 }
 0x14a   : > { %p3420_p10 = por %p3419_p4, %p3418_p8 }
 0x14b   : > { %p3414_p9 = pneg %p3413_p2 }
 0x14d   : > { %p3421_p7 = pnand %p3420_p10, %p3414_p9 }
 0x14f   : > { %3424 = shalt.err (!%p3421_p7)
}
 0x150   : > { %p5110_p1 = scmp.ne.s32.totalorder %s5072_s0, 0  ;;  %s3832_s29 = smov [#allocation29]  }
 0x151   : > { %s566_s3 = sshll.u32 %s3832_s29, 4  ;;  %s2631_s26 = sshll.u32 %s4136_s15, 3  ;;  %s567_s3 = int_to_ptr.vmem [resolvable:$true] %s566_s3 }
 0x152   : > { %2944 = dma.hbm_to_vmem [thread:$0]  (!%p5110_p1), %s5108_s10, 16, %s543_s5, [#allocation25]  }
 0x153   : > { %s5111_s27 = sld [smem:[#allocation72_spill]] }
 0x159   : > { %s5112_s16 = smov %s5111_s27  ;;  %s3425_s13 = scalar_lea.hbm %s5111_s27, 16 }
 0x15a   : > { %p3426_p7 = scmp.ne.s32.totalorder %s5112_s16, %s3425_s13  ;;  %p3432_p12 = scmp.lt.u32.totalorder %s3425_s13, %s5112_s16 }
 0x15c   : > { %p3428_p13 = pnand %p3426_p7, %p5109_p3 }
 0x15e   : > { %p3429_p6 = pneg %p3428_p13 }
 0x160   : > { %p3434_p0 = pnand %p3432_p12, %p3429_p6 }
 0x162   : > { %3437 = shalt.err (!%p3434_p0)
}
 0x163   : > { %s3438_s5 = scalar_lea.vmem %s567_s3, 16  ;;  %s3445_s23 = scalar_lea.vmem %s567_s3, 32 }
 0x164   : > { %p3439_p5 = scmp.ne.s32.totalorder %s567_s3, %s3438_s5  ;;  %p3446_p8 = scmp.lt.s32.totalorder %s567_s3, %s567_s3 }
 0x165   : > { %p3447_p4 = scmp.lt.s32.totalorder %s3445_s23, %s3438_s5 }
 0x166   : > { %p3441_p2 = pnand %p3439_p5, %p5109_p3 }
 0x167   : > { %p3448_p10 = por %p3447_p4, %p3446_p8 }
 0x168   : > { %p3442_p9 = pneg %p3441_p2 }
 0x16a   : > { %p3449_p11 = pnand %p3448_p10, %p3442_p9 }
 0x16c   : > { %3452 = shalt.err (!%p3449_p11)
}
 0x16d   : > { %2950 = dma.hbm_to_vmem [thread:$0]  (!%p5110_p1), %s5112_s16, 16, %s567_s3, [#allocation28]  }
 0x16e   : > { %s2632_s30 = sshll.u32 %s3813_s19, 7  ;;  %s5113_s13 = sld [smem:[#allocation58_spill]] }
 0x16f   : > { %s581_s17 = scalar_lea.vmem [#allocation3], %s2631_s26  ;;  %s578_s0 = scalar_lea.sflag [#allocation4], %s4136_s15 }
 0x170   : > { %s588_s12 = sshll.u32 %s581_s17, 4  ;;  %p5114_p3 = scmp.ne.s32.totalorder %s5096_s21, 0  ;;  %s589_s12 = int_to_ptr.vmem [resolvable:$true] %s588_s12 }
 0x174   : > { %s4454_s9 = scalar_lea.hbm %s5113_s13, %s2632_s30  ;;  %s3458_s23 = scalar_lea.hbm %s5113_s13, 256 }
 0x175   : > { %s3453_s4 = scalar_lea.hbm %s4454_s9, 128  ;;  %p3459_p1 = scmp.lt.u32.totalorder %s4454_s9, %s5113_s13 }
 0x176   : > { %p3454_p11 = scmp.ne.s32.totalorder %s4454_s9, %s3453_s4  ;;  %p3460_p6 = scmp.lt.u32.totalorder %s3458_s23, %s3453_s4 }
 0x177   : > { %p3462_p0 = scmp.lt.u32.totalorder %s3453_s4, %s4454_s9 }
 0x178   : > { %p3456_p7 = pnand %p3454_p11, %p5114_p3  ;;  %p3461_p12 = por %p3460_p6, %p3459_p1 }
 0x17a   : > { %p3457_p13 = pneg %p3456_p7  ;;  %p3463_p5 = por %p3462_p0, %p3461_p12 }
 0x17c   : > { %p3464_p2 = pnand %p3463_p5, %p3457_p13 }
 0x17e   : > { %3467 = shalt.err (!%p3464_p2)
}
 0x17f   : > { %s3468_s26 = scalar_lea.vmem %s589_s12, 128  ;;  %s3833_s30 = smov [#allocation3]  }
 0x180   : > { %p3469_p9 = scmp.ne.s32.totalorder %s589_s12, %s3468_s26  ;;  %s3473_s27 = sshll.u32 %s3833_s30, 4  ;;  %s3474_s27 = int_to_ptr.vmem [resolvable:$false] %s3473_s27 }
 0x181   : > { %s3475_s22 = scalar_lea.vmem %s3474_s27, 256  ;;  %p3476_p10 = scmp.lt.s32.totalorder %s589_s12, %s3474_s27 }
 0x182   : > { %p3471_p8 = pnand %p3469_p9, %p5114_p3  ;;  %p3477_p11 = scmp.lt.s32.totalorder %s3475_s22, %s3468_s26 }
 0x184   : > { %p3472_p4 = pneg %p3471_p8  ;;  %p3478_p7 = por %p3477_p11, %p3476_p10 }
 0x186   : > { %p3479_p1 = pnand %p3478_p7, %p3472_p4 }
 0x188   : > { %3482 = shalt.err (!%p3479_p1)
}
 0x189   : > { %p5115_p6 = scmp.ne.s32.totalorder %s5094_s6, 0  ;;  %s615_s17 = scalar_lea.vmem [#allocation8], %s4136_s15 }
 0x18a   : > { %s622_s4 = sshll.u32 %s615_s17, 4  ;;  %s2638_s3 = sshll.u32 %s4208_s25, 1  ;;  %s623_s4 = int_to_ptr.vmem [resolvable:$true] %s622_s4 }
 0x18b   : > { %2954 = dma.hbm_to_vmem [thread:$0]  (!%p5115_p6), %s4454_s9, 128, %s589_s12, %s578_s0  }
 0x18c   : > { %s3483_s5 = scalar_lea.hbm %s4175_s24, 16  ;;  %s3488_s1 = scalar_lea.hbm %s4974_s2, 32 }
 0x18d   : > { %p3484_p13 = scmp.ne.s32.totalorder %s4175_s24, %s3483_s5  ;;  %p3489_p5 = scmp.lt.u32.totalorder %s4175_s24, %s4974_s2 }
 0x18e   : > { %p3490_p2 = scmp.lt.u32.totalorder %s3488_s1, %s3483_s5  ;;  %p3492_p8 = scmp.lt.u32.totalorder %s3483_s5, %s4175_s24 }
 0x18f   : > { %p3486_p12 = pnand %p3484_p13, %p5114_p3 }
 0x190   : > { %p3491_p9 = por %p3490_p2, %p3489_p5 }
 0x191   : > { %p3487_p0 = pneg %p3486_p12 }
 0x192   : > { %p3493_p4 = por %p3492_p8, %p3491_p9 }
 0x194   : > { %p3494_p10 = pnand %p3493_p4, %p3487_p0 }
 0x196   : > { %3497 = shalt.err (!%p3494_p10)
}
 0x197   : > { %s3498_s15 = scalar_lea.vmem %s623_s4, 16  ;;  %s3834_s9 = smov [#allocation8]  }
 0x198   : > { %p3499_p11 = scmp.ne.s32.totalorder %s623_s4, %s3498_s15  ;;  %s3503_s12 = sshll.u32 %s3834_s9, 4  ;;  %s3504_s12 = int_to_ptr.vmem [resolvable:$false] %s3503_s12 }
 0x199   : > { %s3505_s0 = scalar_lea.vmem %s3504_s12, 32  ;;  %p3506_p13 = scmp.lt.s32.totalorder %s623_s4, %s3504_s12 }
 0x19a   : > { %p3501_p7 = pnand %p3499_p11, %p5114_p3  ;;  %p3507_p12 = scmp.lt.s32.totalorder %s3505_s0, %s3498_s15 }
 0x19c   : > { %p3502_p1 = pneg %p3501_p7  ;;  %p3508_p6 = por %p3507_p12, %p3506_p13 }
 0x19e   : > { %p3509_p2 = pnand %p3508_p6, %p3502_p1 }
 0x1a0   : > { %3512 = shalt.err (!%p3509_p2)
}
 0x1a1   : > { %p5116_p5 = scmp.ne.s32.totalorder %s5094_s6, 0  ;;  %s5117_s27 = scalar_lea.sflag [#allocation7], %s4161_s8 }
 0x1a2   : > { %s2720_s21 = sshll.u32 %s3809_s18, 5  ;;  %s654_s22 = scalar_lea.vmem [#allocation11], %s2638_s3 }
 0x1a3   : > { %2960 = dma.hbm_to_vmem [thread:$0]  (!%p5116_p5), %s4175_s24, 16, %s623_s4, %s5117_s27  }
 0x1a4   : > { %s662_s17 = sshll.u32 %s654_s22, 4  ;;  %s5118_s29 = sld [smem:[#allocation61_spill]]  ;;  %s663_s17 = int_to_ptr.vmem [resolvable:$true] %s662_s17 }
 0x1a5   : > { %p5120_p6 = scmp.ne.s32.totalorder %s5101_s14, 0 }
 0x1aa   : > { %s5119_s9 = smov %s5118_s29  ;;  %s660_s1 = scalar_lea.hbm %s5118_s29, %s2720_s21 }
 0x1ab   : > { %s3513_s26 = scalar_lea.hbm %s660_s1, 32  ;;  %s3518_s15 = scalar_lea.hbm %s5119_s9, 64 }
 0x1ac   : > { %p3514_p3 = scmp.ne.s32.totalorder %s660_s1, %s3513_s26  ;;  %p3519_p8 = scmp.lt.u32.totalorder %s660_s1, %s5119_s9 }
 0x1ad   : > { %p3520_p4 = scmp.lt.u32.totalorder %s3518_s15, %s3513_s26  ;;  %p3522_p11 = scmp.lt.u32.totalorder %s3513_s26, %s660_s1 }
 0x1ae   : > { %p3516_p0 = pnand %p3514_p3, %p5120_p6 }
 0x1af   : > { %p3521_p10 = por %p3520_p4, %p3519_p8 }
 0x1b0   : > { %p3517_p9 = pneg %p3516_p0 }
 0x1b1   : > { %p3523_p7 = por %p3522_p11, %p3521_p10 }
 0x1b3   : > { %p3524_p1 = pnand %p3523_p7, %p3517_p9 }
 0x1b5   : > { %3527 = shalt.err (!%p3524_p1)
}
 0x1b6   : > { %s3528_s4 = scalar_lea.vmem %s663_s17, 32  ;;  %s3835_s3 = smov [#allocation11]  }
 0x1b7   : > { %p3529_p13 = scmp.ne.s32.totalorder %s663_s17, %s3528_s4  ;;  %s3533_s0 = sshll.u32 %s3835_s3, 4  ;;  %s3534_s0 = int_to_ptr.vmem [resolvable:$false] %s3533_s0 }
 0x1b8   : > { %s3535_s27 = scalar_lea.vmem %s3534_s0, 64  ;;  %p3536_p5 = scmp.lt.s32.totalorder %s663_s17, %s3534_s0 }
 0x1b9   : > { %p3531_p12 = pnand %p3529_p13, %p5120_p6  ;;  %p3537_p3 = scmp.lt.s32.totalorder %s3535_s27, %s3528_s4 }
 0x1bb   : > { %p3532_p2 = pneg %p3531_p12  ;;  %p3538_p0 = por %p3537_p3, %p3536_p5 }
 0x1bd   : > { %p3539_p4 = pnand %p3538_p0, %p3532_p2 }
 0x1bf   : > { %3542 = shalt.err (!%p3539_p4)
}
 0x1c0   : > { %p5121_p8 = scmp.ne.s32.totalorder %s5099_s20, 0  ;;  %s5122_s21 = scalar_lea.sflag [#allocation10], %s4161_s8 }
 0x1c1   : > { %s4516_s22 = sshll.u32 %s3809_s18, 4  ;;  %s5123_s29 = sld [smem:[#allocation63_spill]] }
 0x1c2   : > { %2966 = dma.hbm_to_vmem [thread:$0]  (!%p5121_p8), %s660_s1, 32, %s663_s17, %s5122_s21  }
 0x1c3   : > { %s693_s30 = scalar_lea.vmem [#allocation14], %s4208_s25 }
 0x1c4   : > { %s700_s15 = sshll.u32 %s693_s30, 4  ;;  %s701_s15 = int_to_ptr.vmem [resolvable:$true] %s700_s15 }
 0x1c7   : > { %s5124_s6 = smov %s5123_s29  ;;  %s4522_s26 = scalar_lea.hbm %s5123_s29, %s4516_s22 }
 0x1c8   : > { %s3543_s12 = scalar_lea.hbm %s4522_s26, 16  ;;  %s3548_s24 = scalar_lea.hbm %s5124_s6, 32 }
 0x1c9   : > { %p3544_p9 = scmp.ne.s32.totalorder %s4522_s26, %s3543_s12  ;;  %p3549_p7 = scmp.lt.u32.totalorder %s4522_s26, %s5124_s6 }
 0x1ca   : > { %p3550_p1 = scmp.lt.u32.totalorder %s3548_s24, %s3543_s12  ;;  %p3552_p12 = scmp.lt.u32.totalorder %s3543_s12, %s4522_s26 }
 0x1cb   : > { %p3546_p10 = pnand %p3544_p9, %p5120_p6 }
 0x1cc   : > { %p3551_p13 = por %p3550_p1, %p3549_p7 }
 0x1cd   : > { %p3547_p11 = pneg %p3546_p10 }
 0x1ce   : > { %p3553_p2 = por %p3552_p12, %p3551_p13 }
 0x1d0   : > { %p3554_p5 = pnand %p3553_p2, %p3547_p11 }
 0x1d2   : > { %3557 = shalt.err (!%p3554_p5)
}
 0x1d3   : > { %s3558_s0 = scalar_lea.vmem %s701_s15, 16  ;;  %s3836_s27 = smov [#allocation14]  }
 0x1d4   : > { %p3559_p3 = scmp.ne.s32.totalorder %s701_s15, %s3558_s0  ;;  %s3563_s21 = sshll.u32 %s3836_s27, 4  ;;  %s3564_s21 = int_to_ptr.vmem [resolvable:$false] %s3563_s21 }
 0x1d5   : > { %s3565_s5 = scalar_lea.vmem %s3564_s21, 32  ;;  %p3566_p9 = scmp.lt.s32.totalorder %s701_s15, %s3564_s21 }
 0x1d6   : > { %p3561_p0 = pnand %p3559_p3, %p5120_p6  ;;  %p3567_p10 = scmp.lt.s32.totalorder %s3565_s5, %s3558_s0 }
 0x1d8   : > { %p3562_p4 = pneg %p3561_p0  ;;  %p3568_p8 = por %p3567_p10, %p3566_p9 }
 0x1da   : > { %p3569_p1 = pnand %p3568_p8, %p3562_p4 }
 0x1dc   : > { %3572 = shalt.err (!%p3569_p1)
}
 0x1dd   : > { %p5125_p7 = scmp.ne.s32.totalorder %s5099_s20, 0  ;;  %s5126_s23 = scalar_lea.sflag [#allocation13], %s4161_s8 }
 0x1de   : > { %s5127_s12 = sld [smem:[#allocation65_spill]]  ;;  %s731_s1 = scalar_lea.vmem [#allocation17], %s4208_s25 }
 0x1df   : > { %2972 = dma.hbm_to_vmem [thread:$0]  (!%p5125_p7), %s4522_s26, 16, %s701_s15, %s5126_s23  }
 0x1e0   : > { %s738_s24 = sshll.u32 %s731_s1, 4  ;;  %s739_s24 = int_to_ptr.vmem [resolvable:$true] %s738_s24 }
 0x1e4   : > { %s4548_s17 = scalar_lea.hbm %s5127_s12, %s4516_s22  ;;  %s3578_s26 = scalar_lea.hbm %s5127_s12, 32 }
 0x1e5   : > { %s3573_s4 = scalar_lea.hbm %s4548_s17, 16  ;;  %p3579_p12 = scmp.lt.u32.totalorder %s4548_s17, %s5127_s12 }
 0x1e6   : > { %p3574_p8 = scmp.ne.s32.totalorder %s4548_s17, %s3573_s4  ;;  %p3580_p2 = scmp.lt.u32.totalorder %s3578_s26, %s3573_s4 }
 0x1e7   : > { %p3582_p3 = scmp.lt.u32.totalorder %s3573_s4, %s4548_s17 }
 0x1e8   : > { %p3576_p11 = pnand %p3574_p8, %p5120_p6  ;;  %p3581_p5 = por %p3580_p2, %p3579_p12 }
 0x1ea   : > { %p3577_p13 = pneg %p3576_p11  ;;  %p3583_p0 = por %p3582_p3, %p3581_p5 }
 0x1ec   : > { %p3584_p4 = pnand %p3583_p0, %p3577_p13 }
 0x1ee   : > { %3587 = shalt.err (!%p3584_p4)
}
 0x1ef   : > { %s3588_s21 = scalar_lea.vmem %s739_s24, 16  ;;  %s3837_s5 = smov [#allocation17]  }
 0x1f0   : > { %p3589_p9 = scmp.ne.s32.totalorder %s739_s24, %s3588_s21  ;;  %s3593_s23 = sshll.u32 %s3837_s5, 4  ;;  %s3594_s23 = int_to_ptr.vmem [resolvable:$false] %s3593_s23 }
 0x1f1   : > { %s3595_s29 = scalar_lea.vmem %s3594_s23, 32  ;;  %p3596_p8 = scmp.lt.s32.totalorder %s739_s24, %s3594_s23 }
 0x1f2   : > { %p3591_p10 = pnand %p3589_p9, %p5120_p6  ;;  %p3597_p11 = scmp.lt.s32.totalorder %s3595_s29, %s3588_s21 }
 0x1f4   : > { %p3592_p1 = pneg %p3591_p10  ;;  %p3598_p7 = por %p3597_p11, %p3596_p8 }
 0x1f6   : > { %p3599_p2 = pnand %p3598_p7, %p3592_p1 }
 0x1f8   : > { %3602 = shalt.err (!%p3599_p2)
}
 0x1f9   : > { %p5128_p12 = scmp.ne.s32.totalorder %s5099_s20, 0  ;;  %s5129_s30 = scalar_lea.sflag [#allocation16], %s4161_s8 }
 0x1fa   : > { %s5130_s3 = sld [smem:[#allocation67_spill]]  ;;  %s769_s26 = scalar_lea.vmem [#allocation20], %s4208_s25 }
 0x1fb   : > { %2978 = dma.hbm_to_vmem [thread:$0]  (!%p5128_p12), %s4548_s17, 16, %s739_s24, %s5129_s30  }
 0x1fc   : > { %s776_s15 = sshll.u32 %s769_s26, 4  ;;  %s777_s15 = int_to_ptr.vmem [resolvable:$true] %s776_s15 }
 0x200   : > { %s4574_s0 = scalar_lea.hbm %s5130_s3, %s4516_s22  ;;  %s3608_s17 = scalar_lea.hbm %s5130_s3, 32 }
 0x201   : > { %s3603_s27 = scalar_lea.hbm %s4574_s0, 16  ;;  %p3609_p3 = scmp.lt.u32.totalorder %s4574_s0, %s5130_s3 }
 0x202   : > { %p3604_p7 = scmp.ne.s32.totalorder %s4574_s0, %s3603_s27  ;;  %p3610_p0 = scmp.lt.u32.totalorder %s3608_s17, %s3603_s27 }
 0x203   : > { %p3612_p9 = scmp.lt.u32.totalorder %s3603_s27, %s4574_s0 }
 0x204   : > { %p3606_p13 = pnand %p3604_p7, %p5120_p6  ;;  %p3611_p4 = por %p3610_p0, %p3609_p3 }
 0x206   : > { %p3607_p5 = pneg %p3606_p13  ;;  %p3613_p10 = por %p3612_p9, %p3611_p4 }
 0x208   : > { %p3614_p1 = pnand %p3613_p10, %p3607_p5 }
 0x20a   : > { %3617 = shalt.err (!%p3614_p1)
}
 0x20b   : > { %s3618_s29 = scalar_lea.vmem %s777_s15, 16  ;;  %s3838_s30 = smov [#allocation20]  }
 0x20c   : > { %p3619_p8 = scmp.ne.s32.totalorder %s777_s15, %s3618_s29  ;;  %s3623_s1 = sshll.u32 %s3838_s30, 4  ;;  %s3624_s1 = int_to_ptr.vmem [resolvable:$false] %s3623_s1 }
 0x20d   : > { %s3625_s4 = scalar_lea.vmem %s3624_s1, 32  ;;  %p3626_p7 = scmp.lt.s32.totalorder %s777_s15, %s3624_s1 }
 0x20e   : > { %p3621_p11 = pnand %p3619_p8, %p5120_p6  ;;  %p3627_p13 = scmp.lt.s32.totalorder %s3625_s4, %s3618_s29 }
 0x210   : > { %p3622_p2 = pneg %p3621_p11  ;;  %p3628_p12 = por %p3627_p13, %p3626_p7 }
 0x212   : > { %p3629_p0 = pnand %p3628_p12, %p3622_p2 }
 0x214   : > { %3632 = shalt.err (!%p3629_p0)
}
 0x215   : > { %p5131_p3 = scmp.ne.s32.totalorder %s5099_s20, 0  ;;  %s5132_s26 = scalar_lea.sflag [#allocation19], %s4161_s8 }
 0x216   : > { %s5133_s5 = sld [smem:[#allocation68_spill]]  ;;  %s807_s24 = scalar_lea.vmem [#allocation23], %s4208_s25 }
 0x217   : > { %2984 = dma.hbm_to_vmem [thread:$0]  (!%p5131_p3), %s4574_s0, 16, %s777_s15, %s5132_s26  }
 0x218   : > { %s814_s23 = sshll.u32 %s807_s24, 4  ;;  %s815_s23 = int_to_ptr.vmem [resolvable:$true] %s814_s23 }
 0x21c   : > { %s4600_s17 = scalar_lea.hbm %s5133_s5, %s4516_s22  ;;  %s3638_s0 = scalar_lea.hbm %s5133_s5, 32 }
 0x21d   : > { %s3633_s29 = scalar_lea.hbm %s4600_s17, 16  ;;  %p3639_p9 = scmp.lt.u32.totalorder %s4600_s17, %s5133_s5 }
 0x21e   : > { %p3634_p12 = scmp.ne.s32.totalorder %s4600_s17, %s3633_s29  ;;  %p3640_p10 = scmp.lt.u32.totalorder %s3638_s0, %s3633_s29 }
 0x21f   : > { %p3642_p8 = scmp.lt.u32.totalorder %s3633_s29, %s4600_s17 }
 0x220   : > { %p3636_p5 = pnand %p3634_p12, %p5120_p6  ;;  %p3641_p1 = por %p3640_p10, %p3639_p9 }
 0x222   : > { %p3637_p4 = pneg %p3636_p5  ;;  %p3643_p11 = por %p3642_p8, %p3641_p1 }
 0x224   : > { %p3644_p2 = pnand %p3643_p11, %p3637_p4 }
 0x226   : > { %3647 = shalt.err (!%p3644_p2)
}
 0x227   : > { %s3648_s25 = scalar_lea.vmem %s815_s23, 16  ;;  %s3839_s22 = smov [#allocation23]  }
 0x228   : > { %p3649_p7 = scmp.ne.s32.totalorder %s815_s23, %s3648_s25  ;;  %s3653_s26 = sshll.u32 %s3839_s22, 4  ;;  %s3654_s26 = int_to_ptr.vmem [resolvable:$false] %s3653_s26 }
 0x229   : > { %s3655_s27 = scalar_lea.vmem %s3654_s26, 32  ;;  %p3656_p12 = scmp.lt.s32.totalorder %s815_s23, %s3654_s26 }
 0x22a   : > { %p3651_p13 = pnand %p3649_p7, %p5120_p6  ;;  %p3657_p5 = scmp.lt.s32.totalorder %s3655_s27, %s3648_s25 }
 0x22c   : > { %p3652_p0 = pneg %p3651_p13  ;;  %p3658_p3 = por %p3657_p5, %p3656_p12 }
 0x22e   : > { %p3659_p9 = pnand %p3658_p3, %p3652_p0 }
 0x230   : > { %3662 = shalt.err (!%p3659_p9)
}
 0x231   : > { %p5134_p10 = scmp.ne.s32.totalorder %s5099_s20, 0  ;;  %s5135_s21 = sld [smem:[#allocation49_spill]] }
 0x233   : > { %2990 = dma.hbm_to_vmem [thread:$0]  (!%p5134_p10), %s4600_s17, 16, %s815_s23, %s784_s7  }
 0x237   : > { %p5136_p4 = scmp.ne.s32.totalorder %s5135_s21, 0 }
 0x238   : > { %s5137_s14 = sld [smem:[#allocation51_spill]] (!%p5136_p4)  ;;  %s4625_s24 = sand.u32 (!%p5136_p4), 1, %s3793_s28  }
 0x239   : > { %823 = sbr.rel (%p5136_p4) target bundleno = 5377 (0x1501), region = 88  ;;  %s2658_s29 = sshll.u32 (!%p5136_p4), %s4625_s24, 3 }
 0x23a   : > { %s826_s30 = scalar_lea.sflag (!%p5136_p4), [#allocation4], %s4625_s24  ;;  %s4631_s1 = scalar_lea.vmem (!%p5136_p4), [#allocation3], %s2658_s29 }
 0x23e   : > { %p5138_p6 = scmp.ne.s32.totalorder (!%p5136_p4), %s5137_s14, 0 }
 0x240   : > { %3736 = dma.done.wait (%p5138_p6), %s826_s30, 128  }
 0x241   : > { %3738 = vsyncadd (%p5138_p6), %s826_s30, 4294967168  ;;  %s5139_s7 = sld [smem:[#allocation48_spill]] }
 0x247   : > { %s4638_s8 = sand.u32 1, %s5139_s7  }
 0x248   : > { %s835_s20 = scalar_lea.sflag [#allocation7], %s4638_s8 }
 0x249   : > { %3740 = dma.done.wait (%p5138_p6), %s835_s20, 32  }
 0x24a   : > { %3742 = vsyncadd (%p5138_p6), %s835_s20, 4294967264  ;;  %s5140_s23 = sld [smem:[#allocation41_spill]]  ;;  %s5141_s0 = sld [smem:[#allocation55_spill]] }
 0x24b   : > { %s851_s22 = scalar_lea.sflag [#allocation10], %s4638_s8 }
 0x250   : > { %s4647_s15 = sand.u32 1, %s5140_s23   ;;  %p5142_p3 = scmp.ne.s32.totalorder %s5141_s0, 0 }
 0x251   : > { %s2659_s4 = sshll.u32 %s4647_s15, 5 }
 0x252   : > { %s4652_s26 = scalar_lea.vmem [#allocation9], %s2659_s4 }
 0x253   : > { %3744 = dma.done.wait (%p5142_p3), %s851_s22, 544  }
 0x254   : > { %3746 = vsyncadd (%p5142_p3), %s851_s22, 4294966752  ;;  %s2660_s27 = sshll.u32 %s4647_s15, 1  ;;  %s4660_s21 = sshll.u32 %s4647_s15, 4 }
 0x255   : > { %s4662_s14 = scalar_lea.vmem [#allocation11], %s2660_s27  ;;  %s869_s30 = scalar_lea.sflag [#allocation13], %s4638_s8 }
 0x256   : > { %3748 = dma.done.wait (%p5142_p3), %s869_s30, 272  }
 0x257   : > { %3750 = vsyncadd (%p5142_p3), %s869_s30, 4294967024  ;;  %s886_s4 = scalar_lea.sflag [#allocation16], %s4638_s8  ;;  %s4673_s22 = scalar_lea.vmem [#allocation15], %s4660_s21 }
 0x258   : > { %3752 = dma.done.wait (%p5142_p3), %s886_s4, 272  }
 0x259   : > { %3754 = vsyncadd (%p5142_p3), %s886_s4, 4294967024  ;;  %s897_s27 = scalar_lea.vmem [#allocation17], %s4647_s15  ;;  %s903_s25 = scalar_lea.sflag [#allocation19], %s4638_s8 }
 0x25a   : > { %3756 = dma.done.wait (%p5142_p3), %s903_s25, 272  }
 0x25b   : > { %3758 = vsyncadd (%p5142_p3), %s903_s25, 4294967024  ;;  %s2664_s23 = sshll.u32 %s4647_s15, 6  ;;  %s914_s20 = scalar_lea.vmem [#allocation20], %s4647_s15 }
 0x25c   : > { %s920_s17 = scalar_lea.sflag [#allocation22], %s4638_s8  ;;  %s4689_s4 = scalar_lea.vmem [#allocation21], %s2664_s23 }
 0x25d   : > { %3760 = dma.done.wait (%p5142_p3), %s920_s17, 1040  }
 0x25e   : > { %3762 = vsyncadd (%p5142_p3), %s920_s17, 4294966256  ;;  %s931_s30 = scalar_lea.vmem [#allocation23], %s4647_s15  ;;  %p5143_p1 = scmp.eq.s32.totalorder %s5139_s7, 0 }
 0x260   : > { %3764 = dma.done.wait (%p5143_p1), [#allocation25], 32   ;;  %p5144_p8 = pmov %p5143_p1 }
 0x261   : > { %p5145_p11 = pmov %p5143_p1 }
 0x262   : > { %3766 = vsyncadd (%p5144_p8), [#allocation25], 4294967264 }
 0x263   : > { %3768 = dma.done.wait (%p5145_p11), [#allocation28], 528   ;;  %p5146_p2 = pmov %p5143_p1 }
 0x264   : > { %s4706_s8 = scalar_lea.vmem [#allocation30], %s2658_s29  ;;  %s5147_s0 = sld [smem:[#allocation45_spill]] }
 0x265   : > { %3770 = vsyncadd (%p5146_p2), [#allocation28], 4294966768 }
 0x26a   : > { %p2670_p7 = scmp.ne.s32.totalorder %s5147_s0, 0 }
 0x26b   : > { %v1057_v0 = vld [vmem:[%s4631_s1] sm:$0xff] (!%p2670_p7)  ;;  %vm1058_vm0 = vcmask (!%p2670_p7), 261120  }
 0x26c   : > { %1056 = sbr.rel (%p2670_p7) target bundleno = 627 (0x273), region = 160  ;;  %1059 = vst.msk [vmem:[#allocation2] sm:$0xff] (!%p2670_p7), %vm1058_vm0, %v1057_v0 }
 0x273 PF: > { %v4710_v1 = vld [vmem:[#allocation2] sm:$0xff]  ;;  %vm1099_vm1 = vcmask 261120   ;;  %v3840_v5 = vmov 0   ;;  %v3122_v6 = vld [vmem:[%s4652_s26 + $0x14] ss:$8 sps:$4 sm:$0xff]   ;;  %s5148_s29 = scalar_lea.vmem [#allocation6], %s4625_s24  ;;  %v1089_v17 = vlaneseq }
 0x274   : > { %v1145_v2 = vsel %vm1099_vm1, %v4710_v1, 0.0  ;;  %v3119_v3 = vld [vmem:[%s4652_s26 + $0x4] ss:$8 sps:$4 sm:$0xff]   ;;  %v3121_v4 = vld [vmem:[%s4652_s26] ss:$8 sps:$4 sm:$0xff]   ;;  %1135 = vmatprep.mubr.bf16.mxu0 %v3840_v5  ;;  %s5149_s1 = scalar_lea.vmem [#allocation12], %s4660_s21 }
 0x275   : > { %1146 = vadd.xlane.f32.xlu0 %v1145_v2  ;;  %v3124_v7 = vld [vmem:[%s4652_s26 + $0x10] ss:$8 sps:$4 sm:$0xff]   ;;  %1103 = vmatprep.subr.bf16.mxu0 %v3119_v3  ;;  %v1061_v8 = vld [vmem:[%s5148_s29] sm:$0x1]  ;;  %v3841_v16 = vmov 0.0   ;;  %v4728_v18 = vshrl.u32 %v1089_v17, 7  ;;  %s5150_s7 = smov %s5149_s1 }
 0x276   : > { %1104 = vmatpush1.bf16.msra.mxu0 %v3121_v4  ;;  %v1062_v9 = vpack.c.bf16 %v1061_v8, %v1061_v8  ;;  %v3125_v15 = vld [vmem:[%s5149_s1] sm:$0xff]   ;;  %2783 = vmatprep.subr.bf16.mxu1 %v3841_v16  ;;  %v4734_v20 = vld [vmem:[%s4662_s14] sm:$0x3]  ;;  %v3126_v21 = vld [vmem:[%s5150_s7 + $0x8] sm:$0xff]   ;;  %vm3842_vm2 = vmmov 0   ;;  %s3843_s17 = smov 96  }
 0x277   : > { %1105 = vmatprep.subr.bf16.mxu0 %v3122_v6  ;;  %v4731_v19 = vsub.s32 0, %v4728_v18  ;;  %2785 = vmatprep.mubr.msk.bf16.mxu1 %vm3842_vm2, %v3841_v16  ;;  %s5151_s25 = scalar_lea.vmem [#allocation14], %s4647_s15  ;;  %s3844_s26 = smov 88   ;;  %vm1251_vm3 = vcmask 64512   ;;  %vm1315_vm4 = vcmask 1043456  }
 0x278   : > { %v2676_v40 = vld [vmem:[%s5151_s25] ss:$0 sm:$0xff]  ;;  %s3845_s14 = smov 120   ;;  %s5152_s23 = scalar_lea.vmem [#allocation8], %s4625_s24 }
 0x279   : > { %v1092_v22 = vrot.slane %v4734_v20, %v4731_v19  ;;  %v4777_v52 = vld [vmem:[%s5152_s23] ss:$0 sm:$0xff]  ;;  %s3846_s0 = smov 56   ;;  %s3847_s29 = smov 64  }
 0x27a   : > { %1106 = vmatpush1.bf16.msra.mxu0 %v3124_v7  ;;  %s3848_s1 = smov 80   ;;  %s3849_s7 = smov 112  }
 0x27b   : > { %2769 = vmatprep.subr.bf16.mxu0 %v3841_v16  ;;  %s3850_s25 = smov 72   ;;  %s3853_s23 = smov 40  }
 0x27c   : > { %s5155_s15 = sld [smem:[#allocation45_spill]] }
 0x27d   : > { %2675 = vmatmul.mubr.msk.bf16.vlgmr.msra.gmra.mrb[0].mxu0 %vm1099_vm1, %v1062_v9 }
 0x27e   : > { %2770 = vmatpush3.bf16.msra.mxu0 %v3125_v15  ;;  %2773 = vmatprep.mubr.msk.bf16.mxu0 %vm3842_vm2, %v3841_v16 }
 0x27f   : > { %2771 = vmatprep.subr.bf16.mxu0 %v3841_v16 }
 0x282   : > { %2772 = vmatpush3.bf16.msra.mxu0 %v3126_v21  ;;  %p2710_p13 = scmp.ne.s32.totalorder %s5155_s15, 1 }
 0x283   : > { %2777 = vmatprep.subr.bf16.mxu0 %v3841_v16  ;;  %vm3856_vm5 = vmmov (!%p2710_p13), 0  }
 0x302   : > { %v1147_v10 = vpop.xlane.xlu0 %1146 }
 0x303   : > { %v1149_v11 = vmul.f32 0.03125, %v1147_v10 }
 0x305   : > { %v1150_v12 = vsub.f32 %v4710_v1, %v1149_v11 }
 0x307   : > { %v1151_v13 = vmul.f32 %v1150_v12, %v1150_v12 }
 0x309   : > { %v1152_v14 = vsel %vm1099_vm1, %v1151_v13, 0.0 }
 0x30a   : > { %1153 = vadd.xlane.f32.xlu0 %v1152_v14 }
 0x350   : > { %v1137_v23 = vpop.f32.mrb[0].mxu0 }
 0x351   : > { %v1138_v24 = vadd.f32 %v1137_v23, %v1092_v22  ;;  %v4745_v25 = vpop.f32.mrb[1].mxu0 }
 0x352   : > { %v1141_v26 = vpop.f32.mrb[2].mxu0 }
 0x353   : > { %v1159_v27 = vadd.f32 1.0, %v1138_v24  ;;  %v1142_v28 = vpop.f32.mrb[3].mxu0  ;;  %v4750_v36 = vrot.slane %v1138_v24, %v4731_v19 }
 0x355   : > { %v1163_v29 = vrot.slane %v1159_v27, %v4731_v19 }
 0x357   : > { %1165 = vrot.lane.b32.xlu1 %v1163_v29, %s3843_s17  ;;  %v1360_v29 = vld [vmem:[%s4673_s22] sm:$0xf] }
 0x397   : > { %v1154_v30 = vpop.xlane.xlu0 %1153 }
 0x398   : > { %v1155_v31 = vmul.f32 0.03125, %v1154_v30  ;;  %v1524_v30 = vsel %vm1315_vm4, %v1360_v29, 0 }
 0x39a   : > { %v1156_v32 = vadd.f32 1e-05, %v1155_v31  ;;  %v2685_v31 = vld [vmem:[%s4673_s22 + $0x4] sm:$0xf] }
 0x39c   : > { %3137 = vrsqrt.f32 %v1156_v32  ;;  %v1478_v32 = vsel %vm1315_vm4, %v2685_v31, 0 }
 0x3a6   : > { %v3138_v33 = vpop.eup %3137 }
 0x3a7   : > { %v1158_v34 = vmul.f32 %v3138_v33, %v1150_v12 }
 0x3c9   : > { %v1166_v35 = vpop.permute.xlu1 %1165 }
 0x3ca   : > { %v1168_v37 = vmul.f32 %v1166_v35, %v1158_v34 }
 0x3cc   : > { %v1173_v38 = vadd.f32 %v4750_v36, %v1168_v37 }
 0x3ce   : > { %v1174_v39 = vpack.c.bf16 %v1173_v38, %v1173_v38 }
 0x3d0   : > { %2774 = vmatmul.mubr.msk.bf16.vlgmr.msra.gmra.mrb[4].mxu0 %vm1099_vm1, %v1174_v39 }
 0x3d1   : > { %2779 = vmatprep.mubr.msk.bf16.mxu0 %vm3842_vm2, %v3841_v16 }
 0x4a3   : > { %v1235_v41 = vpop.f32.mrb[4].mxu0 }
 0x4a4   : > { %v1236_v42 = vadd.f32 %v2676_v40, %v1235_v41  ;;  %v2775_v43 = vpop.f32.mrb[5].mxu0 }
 0x4a5   : > { %v1238_v44 = vpop.f32.mrb[6].mxu0 }
 0x4a6   : > { %v4758_v45 = vpack.c.bf16 %v1236_v42, %v1236_v42  ;;  %v2776_v46 = vpop.f32.mrb[7].mxu0 }
 0x4a8   : > { %1363 = vrot.lane.b32.xlu0 %v4758_v45, %s3844_s26  ;;  %1249 = vrot.lane.b32.xlu1 %v4758_v45, %s3843_s17  ;;  %s3851_s26 = smov 104  }
 0x4ac   : > { %1361 = vrot.lane.b32.xlu1 %v4758_v45, %s3845_s14  ;;  %s3852_s14 = smov 48  }
 0x51a   : > { %v1250_v47 = vpop.permute.xlu1 %1249  ;;  %v1364_v49 = vpop.permute.xlu0 %1363 }
 0x51b   : > { %v1256_v48 = vsel %vm1251_vm3, %v1250_v47, 0  ;;  %v1369_v50 = vsel %vm1251_vm3, %v1364_v49, 0 }
 0x51c   : > { %2778 = vmatpush3.bf16.xpose.msra.mxu0 %v1256_v48 }
 0x51d   : > { %2789 = vmatprep.subr.bf16.mxu0 %v3841_v16 }
 0x51e   : > { %v1362_v51 = vpop.permute.xlu1 %1361 }
 0x523   : > { %2780 = vmatmul.mubr.msk.bf16.vlgmr.msra.gmra.mrb[8].mxu0 %vm1251_vm3, %v4758_v45 }
 0x524   : > { %2790 = vmatpush3.bf16.xpose.msra.mxu0 %v1369_v50  ;;  %2791 = vmatprep.mubr.msk.bf16.mxu0 %vm3842_vm2, %v3841_v16 }
 0x525   : > { %2801 = vmatprep.subr.bf16.mxu0 %v3841_v16 }
 0x52b   : > { %2792 = vmatmul.mubr.msk.bf16.vlgmr.msra.gmra.mrb[12].mxu0 %vm1251_vm3, %v1362_v51 }
 0x52c   : > { %2803 = vmatprep.mubr.msk.bf16.mxu0 %vm3842_vm2, %v3841_v16  ;;  %2802 = vmatpush3.bf16.msra.mxu0 %v1478_v32 }
 0x52d   : > { %2813 = vmatprep.subr.bf16.mxu0 %v3841_v16 }
 0x5f6   : > { %v1292_v53 = vpop.f32.mrb[8].mxu0 }
 0x5f7   : > { %v1293_v54 = vadd.f32 %v4777_v52, %v1292_v53  ;;  %v2781_v55 = vpop.f32.mrb[9].mxu0 }
 0x5f8   : > { %v1295_v56 = vpop.f32.mrb[10].mxu0 }
 0x5f9   : > { %v2782_v57 = vpop.f32.mrb[11].mxu0  ;;  %v1298_v58 = vsel %vm1251_vm3, %v1293_v54, -inf }
 0x5fa   : > { %1299 = vmax.xlane.f32.xlu1 %v1298_v58 }
 0x5fe   : > { %v1405_v59 = vpop.f32.mrb[12].mxu0 }
 0x5ff   : > { %v1406_v60 = vadd.f32 %v4777_v52, %v1405_v59  ;;  %v2793_v61 = vpop.f32.mrb[13].mxu0 }
 0x600   : > { %v1408_v62 = vpop.f32.mrb[14].mxu0 }
 0x601   : > { %v2794_v63 = vpop.f32.mrb[15].mxu0  ;;  %v1411_v0 = vsel %vm1251_vm3, %v1406_v60, -inf }
 0x602   : > { %1412 = vmax.xlane.f32.xlu0 %v1411_v0 }
 0x618   : > { %1423 = vrot.lane.b32.xlu0 %v4758_v45, %s3846_s0 }
 0x687   : > { %v1300_v2 = vpop.xlane.xlu1 %1299 }
 0x688   : > { %v1301_v3 = vsub.f32 %v1293_v54, %v1300_v2 }
 0x68a   : > { %v1302_v4 = vmul.f32 1.442695, %v1301_v3 }
 0x68c   : > { %3139 = vpow2.f32 %v1302_v4 }
 0x68f   : > { %v1413_v5 = vpop.xlane.xlu0 %1412 }
 0x690   : > { %v1414_v6 = vsub.f32 %v1406_v60, %v1413_v5 }
 0x692   : > { %v1415_v7 = vmul.f32 1.442695, %v1414_v6 }
 0x693   : > { %v1424_v22 = vpop.permute.xlu0 %1423 }
 0x694   : > { %3141 = vpow2.f32 %v1415_v7  ;;  %v1429_v24 = vsel %vm1315_vm4, %v1424_v22, 0 }
 0x696   : > { %v3140_v8 = vpop.eup %3139 }
 0x697   : > { %v1304_v9 = vsel %vm1251_vm3, %v3140_v8, 0.0 }
 0x698   : > { %1305 = vadd.xlane.f32.xlu1 %v1304_v9 }
 0x69e   : > { %v3142_v10 = vpop.eup %3141 }
 0x69f   : > { %v1417_v11 = vsel %vm1251_vm3, %v3142_v10, 0.0 }
 0x6a0   : > { %1418 = vadd.xlane.f32.xlu1 %v1417_v11 }
 0x6b1   : > { %1310 = vrot.lane.b32.xlu1 %v4758_v45, %s3847_s29 }
 0x6b5   : > { %1568 = vrot.lane.b32.xlu1 %v4758_v45, %s3848_s1 }
 0x6b9   : > { %1566 = vrot.lane.b32.xlu1 %v4758_v45, %s3849_s7 }
 0x725   : > { %v1306_v12 = vpop.xlane.xlu1 %1305 }
 0x726   : > { %3143 = vrcp.f32 %v1306_v12 }
 0x72d   : > { %v1419_v13 = vpop.xlane.xlu1 %1418 }
 0x72e   : > { %3145 = vrcp.f32 %v1419_v13 }
 0x730   : > { %v3144_v14 = vpop.eup %3143 }
 0x731   : > { %v1311_v15 = vpop.permute.xlu1 %1310  ;;  %v1308_v17 = vmul.f32 %v3144_v14, %v3140_v8 }
 0x732   : > { %v1317_v21 = vsel %vm1315_vm4, %v1311_v15, 0  ;;  %v2690_v15 = vld [vmem:[%s4673_s22 + $0x8] sm:$0xf] }
 0x733   : > { %2784 = vmatpush3.bf16.msra.mxu1 %v1317_v21  ;;  %v1309_v23 = vpack.c.bf16 %v1308_v17, %v1308_v17  ;;  %v1683_v17 = vsel %vm1315_vm4, %v2690_v15, 0 }
 0x734   : > { %2795 = vmatprep.subr.bf16.mxu1 %v3841_v16 }
 0x735   : > { %v1569_v39 = vpop.permute.xlu1 %1568 }
 0x736   : > { %2786 = vmatmul.mubr.msk.bf16.vlgmr.msra.gmra.mrb[0].mxu1 %vm1251_vm3, %v1309_v23  ;;  %v1574_v44 = vsel %vm1251_vm3, %v1569_v39, 0 }
 0x737   : > { %2796 = vmatpush3.bf16.msra.mxu1 %v1429_v24  ;;  %2797 = vmatprep.mubr.msk.bf16.mxu1 %vm3842_vm2, %v3841_v16 }
 0x738   : > { %v3146_v26 = vpop.eup %3145  ;;  %2807 = vmatprep.subr.bf16.mxu1 %v3841_v16 }
 0x739   : > { %v1421_v27 = vmul.f32 %v3146_v26, %v3142_v10  ;;  %v1567_v47 = vpop.permute.xlu1 %1566 }
 0x73b   : > { %v1422_v28 = vpack.c.bf16 %v1421_v27, %v1421_v27 }
 0x73e   : > { %2798 = vmatmul.mubr.msk.bf16.vlgmr.msra.gmra.mrb[4].mxu1 %vm1251_vm3, %v1422_v28 }
 0x73f   : > { %2809 = vmatprep.mubr.msk.bf16.mxu1 %vm3842_vm2, %v3841_v16  ;;  %2808 = vmatpush3.bf16.msra.mxu1 %v1524_v30 }
 0x740   : > { %2819 = vmatprep.subr.bf16.mxu1 %v3841_v16 }
 0x809   : > { %v1353_v33 = vpop.f32.mrb[0].mxu1 }
 0x80a   : > { %v1359_v34 = vpack.c.bf16 %v1353_v33, %v1353_v33  ;;  %v2787_v35 = vpop.f32.mrb[1].mxu1 }
 0x80b   : > { %v1356_v37 = vpop.f32.mrb[2].mxu1 }
 0x80c   : > { %v2788_v38 = vpop.f32.mrb[3].mxu1  ;;  %2810 = vmatmul.mubr.msk.bf16.vlgmr.msra.gmra.mrb[8].mxu1 %vm1251_vm3, %v1359_v34 }
 0x80d   : > { %2821 = vmatprep.mubr.msk.bf16.mxu1 %vm3842_vm2, %v3841_v16 }
 0x811   : > { %v1465_v40 = vpop.f32.mrb[4].mxu1 }
 0x812   : > { %v1471_v41 = vpack.c.bf16 %v1465_v40, %v1465_v40  ;;  %v2799_v42 = vpop.f32.mrb[5].mxu1  ;;  %v2694_v40 = vld [vmem:[%s4673_s22 + $0xc] sm:$0xf]  ;;  %s3854_s22 = smov 32  }
 0x813   : > { %v1468_v43 = vpop.f32.mrb[6].mxu1 }
 0x814   : > { %v2800_v46 = vpop.f32.mrb[7].mxu1  ;;  %2804 = vmatmul.mubr.msk.bf16.vlgmr.msra.gmra.mrb[16].mxu0 %vm1251_vm3, %v1471_v41  ;;  %v1843_v41 = vsel %vm1315_vm4, %v2694_v40, 0 }
 0x815   : > { %2814 = vmatpush3.bf16.xpose.msra.mxu0 %v1574_v44  ;;  %2815 = vmatprep.mubr.msk.bf16.mxu0 %vm3842_vm2, %v3841_v16 }
 0x816   : > { %2825 = vmatprep.subr.bf16.mxu0 %v3841_v16 }
 0x81c   : > { %2816 = vmatmul.mubr.msk.bf16.vlgmr.msra.gmra.mrb[20].mxu0 %vm1251_vm3, %v1567_v47 }
 0x81d   : > { %2827 = vmatprep.mubr.msk.bf16.mxu0 %vm3842_vm2, %v3841_v16  ;;  %2826 = vmatpush3.bf16.msra.mxu0 %v1683_v17 }
 0x81e   : > { %2837 = vmatprep.subr.bf16.mxu0 %v3841_v16 }
 0x8df   : > { %v1560_v48 = vpop.f32.mrb[8].mxu1 }
 0x8e0   : > { %v2811_v49 = vpop.f32.mrb[9].mxu1 }
 0x8e1   : > { %v1563_v50 = vpop.f32.mrb[10].mxu1 }
 0x8e2   : > { %v2812_v51 = vpop.f32.mrb[11].mxu1 }
 0x8e7   : > { %v1514_v53 = vpop.f32.mrb[16].mxu0 }
 0x8e8   : > { %v4817_v54 = vadd.f32 %v1560_v48, %v1514_v53  ;;  %v2805_v55 = vpop.f32.mrb[17].mxu0 }
 0x8e9   : > { %v1517_v56 = vpop.f32.mrb[18].mxu0 }
 0x8ea   : > { %v2806_v57 = vpop.f32.mrb[19].mxu0 }
 0x8ef   : > { %v1610_v58 = vpop.f32.mrb[20].mxu0 }
 0x8f0   : > { %v1611_v59 = vadd.f32 %v4777_v52, %v1610_v58  ;;  %v2817_v60 = vpop.f32.mrb[21].mxu0  ;;  %v2696_v58 = vld [vmem:[%s897_s27] ss:$0 sm:$0xff]  ;;  %s5153_s27 = scalar_lea.vmem [#allocation18], %s4660_s21 }
 0x8f1   : > { %v1613_v61 = vpop.f32.mrb[22].mxu0  ;;  %s5154_s0 = smov %s5153_s27 }
 0x8f2   : > { %v2818_v62 = vpop.f32.mrb[23].mxu0  ;;  %v1616_v63 = vsel %vm1251_vm3, %v1611_v59, -inf }
 0x8f3   : > { %1617 = vmax.xlane.f32.xlu1 %v1616_v63 }
 0x904   : > { %1728 = vrot.lane.b32.xlu1 %v4758_v45, %s3850_s25 }
 0x908   : > { %1726 = vrot.lane.b32.xlu1 %v4758_v45, %s3851_s26 }
 0x980   : > { %v1618_v0 = vpop.xlane.xlu1 %1617 }
 0x981   : > { %v1619_v2 = vsub.f32 %v1611_v59, %v1618_v0 }
 0x983   : > { %v1620_v3 = vmul.f32 1.442695, %v1619_v2 }
 0x984   : > { %v1729_v11 = vpop.permute.xlu1 %1728 }
 0x985   : > { %3147 = vpow2.f32 %v1620_v3  ;;  %v1734_v13 = vsel %vm1251_vm3, %v1729_v11, 0  ;;  %v3127_v11 = vld [vmem:[%s5153_s27] sm:$0xff]  }
 0x988   : > { %v1727_v14 = vpop.permute.xlu1 %1726 }
 0x98f   : > { %v3148_v4 = vpop.eup %3147 }
 0x990   : > { %v1622_v5 = vsel %vm1251_vm3, %v3148_v4, 0.0 }
 0x991   : > { %1623 = vadd.xlane.f32.xlu0 %v1622_v5 }
 0x9a7   : > { %1628 = vrot.lane.b32.xlu0 %v4758_v45, %s3852_s14 }
 0xa1e   : > { %v1624_v6 = vpop.xlane.xlu0 %1623 }
 0xa1f   : > { %3149 = vrcp.f32 %v1624_v6 }
 0xa22   : > { %v1629_v7 = vpop.permute.xlu0 %1628 }
 0xa23   : > { %v1634_v8 = vsel %vm1315_vm4, %v1629_v7, 0 }
 0xa24   : > { %2820 = vmatpush3.bf16.msra.mxu1 %v1634_v8 }
 0xa25   : > { %2831 = vmatprep.subr.bf16.mxu1 %v3841_v16 }
 0xa29   : > { %v3150_v9 = vpop.eup %3149 }
 0xa2a   : > { %v1626_v10 = vmul.f32 %v3150_v9, %v3148_v4 }
 0xa2c   : > { %v1627_v12 = vpack.c.bf16 %v1626_v10, %v1626_v10 }
 0xa2e   : > { %2822 = vmatmul.mubr.msk.bf16.vlgmr.msra.gmra.mrb[12].mxu1 %vm1251_vm3, %v1627_v12  ;;  %v1095_v12 = vsub.s32 1, %v4728_v18 }
 0xa2f   : > { %2832 = vmatpush3.bf16.xpose.msra.mxu1 %v1734_v13  ;;  %2833 = vmatprep.mubr.msk.bf16.mxu1 %vm3842_vm2, %v3841_v16 }
 0xa30   : > { %2843 = vmatprep.subr.bf16.mxu1 %v3841_v16  ;;  %v1096_v17 = vrot.slane %v4734_v20, %v1095_v12  ;;  %v3130_v20 = vld [vmem:[%s4689_s4 + $0x8] sm:$0xff]  }
 0xa36   : > { %2834 = vmatmul.mubr.msk.bf16.vlgmr.msra.gmra.mrb[16].mxu1 %vm1251_vm3, %v1727_v14 }
 0xa37   : > { %2845 = vmatprep.mubr.msk.bf16.mxu1 %vm3842_vm2, %v3841_v16  ;;  %2844 = vmatpush3.bf16.msra.mxu1 %v1843_v41 }
 0xa38   : > { %2857 = vmatprep.subr.bf16.mxu1 %v3841_v16 }
 0xb01   : > { %v1670_v21 = vpop.f32.mrb[12].mxu1 }
 0xb02   : > { %v1676_v22 = vpack.c.bf16 %v1670_v21, %v1670_v21  ;;  %v2823_v23 = vpop.f32.mrb[13].mxu1 }
 0xb03   : > { %v1673_v24 = vpop.f32.mrb[14].mxu1 }
 0xb04   : > { %v2824_v26 = vpop.f32.mrb[15].mxu1  ;;  %2828 = vmatmul.mubr.msk.bf16.vlgmr.msra.gmra.mrb[24].mxu0 %vm1251_vm3, %v1676_v22 }
 0xb05   : > { %2839 = vmatprep.mubr.msk.bf16.mxu0 %vm3842_vm2, %v3841_v16 }
 0xb09   : > { %v1770_v27 = vpop.f32.mrb[16].mxu1 }
 0xb0a   : > { %v1771_v28 = vadd.f32 %v4777_v52, %v1770_v27  ;;  %v2835_v29 = vpop.f32.mrb[17].mxu1 }
 0xb0b   : > { %v1773_v30 = vpop.f32.mrb[18].mxu1  ;;  %v3129_v29 = vld [vmem:[%s4689_s4] sm:$0xff]  }
 0xb0c   : > { %v2836_v31 = vpop.f32.mrb[19].mxu1  ;;  %v1776_v32 = vsel %vm1251_vm3, %v1771_v28, -inf  ;;  %v3132_v30 = vld [vmem:[%s4689_s4 + $0x18] sm:$0xff]  }
 0xb0d   : > { %1777 = vmax.xlane.f32.xlu0 %v1776_v32  ;;  %v3133_v31 = vld [vmem:[%s4689_s4 + $0x20] sm:$0xff]   ;;  %v3134_v32 = vld [vmem:[%s4689_s4 + $0x28] sm:$0xff]  }
 0xb23   : > { %1788 = vrot.lane.b32.xlu0 %v4758_v45, %s3853_s23 }
 0xb9a   : > { %v1778_v33 = vpop.xlane.xlu0 %1777 }
 0xb9b   : > { %v1779_v34 = vsub.f32 %v1771_v28, %v1778_v33  ;;  %v3135_v33 = vld [vmem:[%s4689_s4 + $0x30] sm:$0xff]  }
 0xb9d   : > { %v1780_v35 = vmul.f32 1.442695, %v1779_v34  ;;  %v3136_v34 = vld [vmem:[%s4689_s4 + $0x38] sm:$0xff]  }
 0xb9e   : > { %v1789_v37 = vpop.permute.xlu0 %1788 }
 0xb9f   : > { %3151 = vpow2.f32 %v1780_v35  ;;  %v1794_v38 = vsel %vm1315_vm4, %v1789_v37, 0  ;;  %v2697_v35 = vld [vmem:[%s914_s20] ss:$0 sm:$0xff] }
 0xba0   : > { %2838 = vmatpush3.bf16.msra.mxu0 %v1794_v38 }
 0xba1   : > { %2849 = vmatprep.subr.bf16.mxu0 %v3841_v16 }
 0xba9   : > { %v3152_v52 = vpop.eup %3151 }
 0xbaa   : > { %v1782_v39 = vsel %vm1251_vm3, %v3152_v52, 0.0 }
 0xbab   : > { %1783 = vadd.xlane.f32.xlu1 %v1782_v39 }
 0xbd7   : > { %v1719_v45 = vpop.f32.mrb[24].mxu0 }
 0xbd8   : > { %v1725_v42 = vadd.f32 %v1719_v45, %v4817_v54  ;;  %v2829_v43 = vpop.f32.mrb[25].mxu0 }
 0xbd9   : > { %v1722_v44 = vpop.f32.mrb[26].mxu0 }
 0xbda   : > { %v2830_v46 = vpop.f32.mrb[27].mxu0 }
 0xc38   : > { %v1784_v47 = vpop.xlane.xlu1 %1783 }
 0xc39   : > { %3153 = vrcp.f32 %v1784_v47 }
 0xc43   : > { %v3154_v48 = vpop.eup %3153 }
 0xc44   : > { %v1786_v49 = vmul.f32 %v3154_v48, %v3152_v52 }
 0xc46   : > { %v1787_v50 = vpack.c.bf16 %v1786_v49, %v1786_v49 }
 0xc48   : > { %2840 = vmatmul.mubr.msk.bf16.vlgmr.msra.gmra.mrb[28].mxu0 %vm1251_vm3, %v1787_v50  ;;  %v2701_v50 = vld [vmem:[%s931_s30] ss:$0 sm:$0xff] }
 0xc49   : > { %2853 = vmatprep.mubr.msk.bf16.mxu0 %vm3842_vm2, %v3841_v16  ;;  %2850 = vmatpush3.bf16.msra.mxu0 %v3127_v11  ;;  %v3857_v11 = vmov (!%p2710_p13), 0.0  }
 0xc4a   : > { %2851 = vmatprep.subr.bf16.mxu0 %v3841_v16 }
 0xd1b   : > { %v1830_v51 = vpop.f32.mrb[28].mxu0 }
 0xd1c   : > { %v1836_v53 = vpack.c.bf16 %v1830_v51, %v1830_v51  ;;  %v2841_v55 = vpop.f32.mrb[29].mxu0 }
 0xd1d   : > { %v1833_v56 = vpop.f32.mrb[30].mxu0 }
 0xd1e   : > { %v2842_v57 = vpop.f32.mrb[31].mxu0  ;;  %2846 = vmatmul.mubr.msk.bf16.vlgmr.msra.gmra.mrb[20].mxu1 %vm1251_vm3, %v1836_v53 }
 0xd1f   : > { %2873 = vmatprep.mubr.msk.bf16.mxu1 %vm3842_vm2, %v3841_v16  ;;  %2858 = vmatpush3.bf16.msra.mxu1 %v3129_v29 }
 0xd20   : > { %2859 = vmatprep.subr.bf16.mxu1 %v3841_v16 }
 0xd23   : > { %2860 = vmatpush3.bf16.msra.mxu1 %v3130_v20 }
 0xd24   : > { %2861 = vmatprep.subr.bf16.mxu1 %v3841_v16 }
 0xdf1   : > { %v1879_v54 = vpop.f32.mrb[20].mxu1 }
 0xdf2   : > { %v1885_v59 = vadd.f32 %v1879_v54, %v1725_v42  ;;  %v2847_v60 = vpop.f32.mrb[21].mxu1 }
 0xdf3   : > { %v1882_v61 = vpop.f32.mrb[22].mxu1 }
 0xdf4   : > { %v1893_v62 = vadd.f32 %v2696_v58, %v1885_v59  ;;  %v2848_v63 = vpop.f32.mrb[23].mxu1 }
 0xdf6   : > { %1895 = vrot.lane.b32.xlu1 %v1893_v62, %s3847_s29 }
 0xe68   : > { %v1896_v0 = vpop.permute.xlu1 %1895 }
 0xe69   : > { %v1898_v2 = vmul.f32 %v1896_v0, %v4750_v36 }
 0xe6b   : > { %1900 = vrot.lane.b32.xlu0 %v1898_v2, %s3847_s29 }
 0xedd   : > { %v1901_v3 = vpop.permute.xlu0 %1900 }
 0xede   : > { %v4863_v4 = vadd.f32 %v1901_v3, %v4710_v1  ;;  %v3128_v1 = vld [vmem:[%s5154_s0 + $0x8] sm:$0xff]  }
 0xedf   : > { %2852 = vmatpush3.bf16.msra.mxu0 %v3128_v1 }
 0xee0   : > { %v1904_v5 = vsel %vm1099_vm1, %v4863_v4, 0.0 }
 0xee1   : > { %1905 = vadd.xlane.f32.xlu1 %v1904_v5 }
 0xf6e   : > { %v1906_v6 = vpop.xlane.xlu1 %1905 }
 0xf6f   : > { %v1907_v7 = vmul.f32 0.03125, %v1906_v6  ;;  %v2165_v6 = vld [vmem:[#allocation27] sm:$0xff] (!%p2710_p13) }
 0xf71   : > { %v1908_v8 = vsub.f32 %v4863_v4, %v1907_v7  ;;  %v2166_v7 = vld [vmem:[#allocation27 + $0x8] sm:$0xff] (!%p2710_p13) }
 0xf73   : > { %v1909_v9 = vmul.f32 %v1908_v8, %v1908_v8 }
 0xf75   : > { %v1910_v10 = vsel %vm1099_vm1, %v1909_v9, 0.0  ;;  %v2889_v9 = vpack.c.bf16 (!%p2710_p13), %v2166_v7, %v2165_v6 }
 0xf76   : > { %1911 = vadd.xlane.f32.xlu0 %v1910_v10  ;;  %v2168_v10 = vld [vmem:[#allocation27 + $0x18] sm:$0xff] (!%p2710_p13) }
 0xf8c   : > { %1924 = vrot.lane.b32.xlu0 %v4750_v36, %s3854_s22  ;;  %v1140_v36 = vadd.f32 %v4745_v25, %v1096_v17  ;;  %v3131_v25 = vld [vmem:[%s4689_s4 + $0x10] sm:$0xff]   ;;  %v2711_v17 = vld [vmem:[#allocation24] ss:$0 sm:$0xff] (!%p2710_p13) }
 0xf8d   : > { %2862 = vmatpush3.bf16.msra.mxu1 %v3131_v25 }
 0xf8e   : > { %v1917_v21 = vadd.f32 1.0, %v1140_v36  ;;  %2863 = vmatprep.subr.bf16.mxu1 %v3841_v16  ;;  %v2119_v54 = vrot.slane %v1140_v36, %v4731_v19 }
 0xf90   : > { %v1921_v24 = vrot.slane %v1917_v21, %v4731_v19  ;;  %v2712_v21 = vld [vmem:[#allocation26] ss:$0 sm:$0xff] (!%p2710_p13) }
 0xf91   : > { %2864 = vmatpush3.bf16.msra.mxu1 %v3132_v30 }
 0xf92   : > { %2865 = vmatprep.subr.bf16.mxu1 %v3841_v16 }
 0xf95   : > { %2866 = vmatpush3.bf16.msra.mxu1 %v3133_v31 }
 0xf96   : > { %2867 = vmatprep.subr.bf16.mxu1 %v3841_v16 }
 0xf99   : > { %2868 = vmatpush3.bf16.msra.mxu1 %v3134_v32 }
 0xf9a   : > { %2869 = vmatprep.subr.bf16.mxu1 %v3841_v16 }
 0xf9d   : > { %2870 = vmatpush3.bf16.msra.mxu1 %v3135_v33 }
 0xf9e   : > { %2871 = vmatprep.subr.bf16.mxu1 %v3841_v16 }
 0xfa1   : > { %2872 = vmatpush3.bf16.msra.mxu1 %v3136_v34 }
0x1003   : > { %v1912_v13 = vpop.xlane.xlu0 %1911 }
0x1004   : > { %v1913_v14 = vmul.f32 0.03125, %v1912_v13 }
0x1006   : > { %v1914_v15 = vadd.f32 1e-05, %v1913_v14 }
0x1007   : > { %v1925_v18 = vpop.permute.xlu0 %1924 }
0x1008   : > { %3155 = vrsqrt.f32 %v1914_v15 }
0x1012   : > { %v3156_v22 = vpop.eup %3155 }
0x1013   : > { %v1916_v23 = vmul.f32 %v3156_v22, %v1908_v8  ;;  %v2167_v8 = vld [vmem:[#allocation27 + $0x10] sm:$0xff] (!%p2710_p13) }
0x1014   : > { %v2892_v1 = vpack.c.bf16 (!%p2710_p13), %v2168_v10, %v2167_v8 }
0x1015   : > { %v1922_v26 = vmul.f32 %v1921_v24, %v1916_v23  ;;  %v2713_v24 = vld [vmem:[#allocation29] ss:$0 sm:$0xff] (!%p2710_p13) }
0x1017   : > { %v1927_v27 = vadd.f32 %v1925_v18, %v1922_v26 }
0x1019   : > { %v1928_v28 = vpack.c.bf16 %v1927_v27, %v1927_v27 }
0x101b   : > { %2854 = vmatmul.mubr.msk.bf16.vlgmr.msra.gmra.mrb[32].mxu0 %vm1099_vm1, %v1928_v28 }
0x101c   : > { %2885 = vmatprep.mubr.msk.f32.mxu0 (!%p2710_p13), %vm3856_vm5, %v3857_v11 }
0x10ee   : > { %v1989_v37 = vpop.f32.mrb[32].mxu0 }
0x10ef   : > { %v1990_v38 = vadd.f32 %v2697_v35, %v1989_v37  ;;  %v2855_v52 = vpop.f32.mrb[33].mxu0 }
0x10f0   : > { %v1992_v39 = vpop.f32.mrb[34].mxu0 }
0x10f1   : > { %v1995_v40 = vmul.f32 %v1990_v38, %v1990_v38  ;;  %v2856_v41 = vpop.f32.mrb[35].mxu0 }
0x10f3   : > { %v1996_v45 = vmul.f32 %v1995_v40, %v1990_v38 }
0x10f5   : > { %v1997_v42 = vmul.f32 0.044715, %v1996_v45 }
0x10f7   : > { %v1998_v43 = vadd.f32 %v1997_v42, %v1990_v38 }
0x10f9   : > { %v1999_v44 = vmul.f32 0.7978846, %v1998_v43 }
0x10fb   : > { %3157 = vtanh.f32 %v1999_v44 }
0x1105   : > { %v3158_v46 = vpop.eup %3157 }
0x1106   : > { %v2001_v47 = vadd.f32 1.0, %v3158_v46 }
0x1108   : > { %v2002_v48 = vmul.f32 0.5, %v2001_v47 }
0x110a   : > { %v2003_v49 = vmul.f32 %v2002_v48, %v1990_v38 }
0x110c   : > { %v2004_v16 = vpack.c.bf16 %v2003_v49, %v2003_v49 }
0x110e   : > { %2874 = vmatmul.mubr.bf16.vlgmr.msra.gmra.mrb[24].mxu1 %v2004_v16 }
0x11e1   : > { %v2110_v51 = vpop.f32.mrb[24].mxu1 }
0x11e2   : > { %v2111_v53 = vadd.f32 %v2701_v50, %v2110_v51  ;;  %v2875_v55 = vpop.f32.mrb[25].mxu1 }
0x11e3   : > { %v2113_v56 = vpop.f32.mrb[26].mxu1 }
0x11e4   : > { %2121 = vrot.lane.b32.xlu1 %v2111_v53, %s3854_s22  ;;  %v2876_v57 = vpop.f32.mrb[27].mxu1 }
0x1256   : > { %v2122_v58 = vpop.permute.xlu1 %2121 }
0x1257   : > { %v2124_v59 = vmul.f32 %v2122_v58, %v2119_v54 }
0x1259   : > { %2126 = vrot.lane.b32.xlu1 %v2124_v59, %s3843_s17 }
0x12c8   : > { %2134 = sbr.rel (%p2710_p13) target bundleno = 5350 (0x14e6), region = 164 }
0x12cb   : > { %v2127_v60 = vpop.permute.xlu1 %2126 }
0x12cc   : > { %v2129_v61 = vadd.f32 %v2127_v60, %v4863_v4  ;;  %v3855_v4 = vmov (!%p2710_p13), 0.0|0.0  }
0x12cd   : > { %2888 = vmatprep.subr.bf16.mxu0 (!%p2710_p13), %v3855_v4 }
0x12ce   : > { %2130 = vst.msk [vmem:[#allocation2] sm:$0xff] %vm1099_vm1, %v2129_v61  ;;  %2890 = vmatpush3.bf16.msra.mxu0 (!%p2710_p13), %v2889_v9 }
0x12cf   : > { %2891 = vmatprep.subr.bf16.mxu0 %v3855_v4 }
0x12d2   : > { %2893 = vmatpush3.bf16.msra.mxu0 %v2892_v1 }
0x12d5   : > { %v2135_v62 = vld [vmem:[#allocation2] sm:$0xff] }
0x12d6   : > { %v2136_v63 = vsel %vm1099_vm1, %v2135_v62, 0.0 }
0x12d7   : > { %2137 = vadd.xlane.f32.xlu0 %v2136_v63 }
0x1364   : > { %v2138_v0 = vpop.xlane.xlu0 %2137 }
0x1365   : > { %v2139_v2 = vmul.f32 0.03125, %v2138_v0 }
0x1367   : > { %v2140_v3 = vsub.f32 %v2135_v62, %v2139_v2 }
0x1369   : > { %v2141_v19 = vmul.f32 %v2140_v3, %v2140_v3 }
0x136b   : > { %v2142_v5 = vsel %vm1099_vm1, %v2141_v19, 0.0 }
0x136c   : > { %2143 = vadd.xlane.f32.xlu0 %v2142_v5 }
0x13f9   : > { %v2144_v12 = vpop.xlane.xlu0 %2143 }
0x13fa   : > { %v2145_v13 = vmul.f32 0.03125, %v2144_v12 }
0x13fc   : > { %v2146_v14 = vadd.f32 1e-05, %v2145_v13 }
0x13fe   : > { %3159 = vrsqrt.f32 %v2146_v14 }
0x1408   : > { %v3160_v15 = vpop.eup %3159 }
0x1409   : > { %v2148_v36 = vmul.f32 %v3160_v15, %v2140_v3 }
0x140b   : > { %v2156_v22 = vmul.f32 %v2711_v17, %v2148_v36 }
0x140d   : > { %v2164_v23 = vadd.f32 %v2712_v21, %v2156_v22 }
0x140f   : > { %2886 = vmatmul.mubr.msk.f32.vlgmr.msra.gmra.mrb[0].mxu0 %vm1099_vm1, %v2164_v23 }
0x14e2   : > { %v2245_v26 = vpop.f32.mrb[0].mxu0 }
0x14e3   : > { %v2246_v18 = vadd.f32 %v2713_v24, %v2245_v26  ;;  %v2887_v27 = vpop.f32.mrb[1].mxu0 }
0x14e5   : > { %2249 = vst [vmem:[%s4706_s8] sm:$0xff] %v2246_v18 }
0x14e6 PF: > { %s5156_s21 = sld [smem:[#allocation46_spill]]  ;;  %s5157_s20 = sld [smem:[#allocation56_spill]] }
0x14e7   : > { %s5158_s29 = sld [smem:[#allocation73_spill]]  ;;  %s2264_s25 = sshll.u32 %s4706_s8, 4  ;;  %s2265_s25 = int_to_ptr.vmem [resolvable:$true] %s2264_s25 }
0x14e8   : > { %s2251_s26 = scalar_lea.sflag [#allocation5], %s4625_s24  ;;  %s3663_s14 = scalar_lea.vmem %s2265_s25, 128 }
0x14e9   : > { %p3664_p0 = scmp.ne.s32.totalorder %s2265_s25, %s3663_s14  ;;  %s3858_s23 = smov [#allocation30]  }
0x14ea   : > { %s3667_s22 = sshll.u32 %s3858_s23, 4  ;;  %s3668_s22 = int_to_ptr.vmem [resolvable:$false] %s3667_s22 }
0x14eb   : > { %s3669_s27 = scalar_lea.vmem %s3668_s22, 256  ;;  %p3670_p10 = scmp.lt.s32.totalorder %s2265_s25, %s3668_s22 }
0x14ec   : > { %s2716_s30 = sshll.u32 %s5156_s21, 7  ;;  %p5160_p12 = scmp.ne.s32.totalorder %s5157_s20, 0 }
0x14ed   : > { %s5159_s7 = smov %s5158_s29  ;;  %s4914_s1 = scalar_lea.hbm %s5158_s29, %s2716_s30 }
0x14ee   : > { %p3665_p5 = pnand %p3664_p0, %p5160_p12  ;;  %p3671_p4 = scmp.lt.s32.totalorder %s3669_s27, %s3663_s14 }
0x14f0   : > { %p3666_p9 = pneg %p3665_p5  ;;  %p3672_p6 = por %p3671_p4, %p3670_p10 }
0x14f2   : > { %p3673_p3 = pnand %p3672_p6, %p3666_p9 }
0x14f4   : > { %3676 = shalt.err (!%p3673_p3)
}
0x14f5   : > { %s3677_s24 = scalar_lea.hbm %s4914_s1, 128  ;;  %s3681_s15 = scalar_lea.hbm %s5159_s7, 256 }
0x14f6   : > { %p3678_p1 = scmp.ne.s32.totalorder %s4914_s1, %s3677_s24  ;;  %p3682_p2 = scmp.lt.u32.totalorder %s4914_s1, %s5159_s7 }
0x14f7   : > { %p3683_p7 = scmp.lt.u32.totalorder %s3681_s15, %s3677_s24  ;;  %p3685_p0 = scmp.lt.u32.totalorder %s3677_s24, %s4914_s1 }
0x14f8   : > { %p3679_p8 = pnand %p3678_p1, %p5160_p12 }
0x14f9   : > { %p3684_p13 = por %p3683_p7, %p3682_p2 }
0x14fa   : > { %p3680_p11 = pneg %p3679_p8 }
0x14fb   : > { %p3686_p5 = por %p3685_p0, %p3684_p13 }
0x14fd   : > { %p3687_p9 = pnand %p3686_p5, %p3680_p11 }
0x14ff   : > { %3690 = shalt.err (!%p3687_p9)
}
0x1500   : > { %2936 = dma.vmem_to_hbm [thread:$0]  (%p5160_p12), %s2265_s25, 128, %s4914_s1, %s2251_s26  }
0x1501 PF: > { %s5161_s4 = sld [smem:[#allocation47_spill]]  ;;  %s5162_s17 = sld [smem:[#allocation43_spill]] }
0x1502   : > { %s5163_s29 = sld [smem:[#allocation57_spill]] }
0x1507   : > { %p3004_p10 = scmp.ge.s32.totalorder %s5161_s4, 2  ;;  %s2276_s14 = sand.u32 1, %s5162_s17  }
0x1508   : > { %p5164_p4 = scmp.ne.s32.totalorder %s5163_s29, 0  ;;  %s2277_s23 = scalar_lea.sflag [#allocation5], %s2276_s14 }
0x150a   : > { %p2992_p6 = pnand %p3004_p10, %p5164_p4 }
0x150c   : > { %3772 = dma.done.wait (!%p2992_p6), %s2277_s23, 128  }
0x150d   : > { %3774 = vsyncadd (!%p2992_p6), %s2277_s23, 4294967168  ;;  %s53_s1 = sadd.s32 1, %s5161_s4   ;;  %s5165_s24 = sld [smem:[#allocation41_spill]] }
0x150e   : > { %p50_p3 = scmp.ge.s32.totalorder %s53_s1, 6   ;;  %s5166_s25 = sld [smem:[#allocation42_spill]] }
0x150f   : > { %s5167_s26 = sld [smem:[#allocation53_spill]]  ;;  %s5168_s20 = sld [smem:[#allocation44_spill]] }
0x1510   : > { %s5169_s29 = sld [smem:[#allocation54_spill]]  ;;  %s5170_s22 = sld [smem:[#allocation50_spill]] }
0x1511   : > { %s5171_s8 = sld [smem:[#allocation52_spill]]  ;;  %s5172_s27 = smov %s3793_s28 }
0x1512   : > { %s5174_s0 = smov %s3809_s18  ;;  %s5175_s30 = smov %s3813_s19 }
0x1513   :  { %52 = sbr.rel (!%p50_p3) target bundleno = 40 (0x28), region = 304 }
0x1515   : > { %s5173_s28 = smov %s5168_s20 }
0x1516   : > { %s5176_s18 = smov %s5170_s22 }
0x1517   : > { %s5177_s19 = smov %s5171_s8 }
0x151a   :  { %2282 = vsyncpa [#allocation4], 1 }
0x151b   :  { %2284 = vsyncpa [#allocation4 + $0x1], 1 }
0x151c   :  { %2285 = vsyncpa [#allocation7], 1 }
0x151d   :  { %2287 = vsyncpa [#allocation7 + $0x1], 1 }
0x151e   :  { %2288 = vsyncpa [#allocation10], 1 }
0x151f   :  { %2290 = vsyncpa [#allocation10 + $0x1], 1 }
0x1520   :  { %2291 = vsyncpa [#allocation13], 1 }
0x1521   :  { %2293 = vsyncpa [#allocation13 + $0x1], 1 }
0x1522   :  { %2294 = vsyncpa [#allocation16], 1 }
0x1523   :  { %2296 = vsyncpa [#allocation16 + $0x1], 1 }
0x1524   :  { %2297 = vsyncpa [#allocation19], 1 }
0x1525   :  { %2299 = vsyncpa [#allocation19 + $0x1], 1 }
0x1526   :  { %2300 = vsyncpa [#allocation22], 1 }
0x1527   :  { %2302 = vsyncpa [#allocation22 + $0x1], 1 }
0x1528   :  { %2303 = vsyncpa [#allocation25], 1 }
0x1529   :  { %2304 = vsyncpa [#allocation28], 1 }
0x152a   :  { %2305 = vsyncpa [#allocation5], 1 }
0x152b   :  { %2307 = vsyncpa [#allocation5 + $0x1], 1 }

</bundles_post_ra>
